<compile_context>
chip_gen: v7x
topology: tpu7x:2x2x1
jax: 0.10.0
libtpu: 0.0.40
codegen_flags: <defaults>
</compile_context>

<pallas_src>
from functools import partial

import jax
import jax.numpy as jnp
from jax.experimental import pallas as pl
from jax.experimental.pallas import tpu as pltpu


# ---------------------------------------------------------------------------
# Generation-aware tuning knobs.
# ---------------------------------------------------------------------------
def _tpu_vmem_capacity_bytes():
    try:
        return int(pltpu.get_tpu_info().vmem_capacity_bytes)
    except Exception:
        pass
    try:
        kind = jax.devices()[0].device_kind.lower()
        if "7" in kind:                       # v7x-class: 64 MiB per TensorCore
            return 64 * 1024 * 1024
    except Exception:
        pass
    return 128 * 1024 * 1024                  # v5e/v6e-class


def _vmem_limit_bytes():
    cap = _tpu_vmem_capacity_bytes()
    if cap <= 64 * 1024 * 1024:
        return 48 * 1024 * 1024               # v7x: leave room for Mosaic scratch
    return 100 * 1024 * 1024                  # v5e/v6e: physical 128 MiB


def _max_q_tile():
    # Bigger q-tiles amortize per-grid-step overhead (v5e/v6e); tighter on v7x.
    return 256 if _tpu_vmem_capacity_bytes() <= 64 * 1024 * 1024 else 512


def _bf16_eup_ok():
    # bf16 exp is only a win (and only natively supported) on v6e / v7x.
    try:
        kind = jax.devices()[0].device_kind.lower()
    except Exception:
        return False
    return not any(t in kind for t in ("v2", "v3", "v4", "v5"))


# ---------------------------------------------------------------------------
# Kernel 1: GroupNorm + fused 1x1 q/v projection + K-transposed projection.
# ---------------------------------------------------------------------------
def groupnorm_qkv_kernel(x_ref, gamma_ref, beta_ref, wqv_ref, bqv_ref,
                         wk_ref, bk_ref, q_ref, kt_ref, v_ref,
                         scale_s, shift_s, *, num_groups, eps, row_chunk):
    r = pl.program_id(1)
    _, N, C = x_ref.shape
    G = num_groups
    cg = C // G

    # ---- once per batch element (row-chunk 0): GroupNorm statistics ----
    @pl.when(r == 0)
    def _stats():
        x = x_ref[0].astype(jnp.float32)                         # (N, C)

        # Group-membership mask from iotas (no integer division, no HBM helper).
        c_idx = jax.lax.broadcasted_iota(jnp.int32, (G, C), 1)
        g_lo = jax.lax.broadcasted_iota(jnp.int32, (G, C), 0) * cg
        gmask = (c_idx >= g_lo) & (c_idx < g_lo + cg)            # (G, C)
        inv_cnt = jnp.float32(1.0 / (N * cg))

        def group_mean(vec_1c):
            """(1,C) per-channel sums -> (1,C) holding each channel's group mean."""
            spread = jnp.where(gmask, jnp.broadcast_to(vec_1c, (G, C)), 0.0)
            gsum = jnp.sum(spread, axis=1, keepdims=True)        # (G, 1) lane reduce
            back = jnp.where(gmask, jnp.broadcast_to(gsum, (G, C)), 0.0)
            return jnp.sum(back, axis=0, keepdims=True) * inv_cnt

        # Two-pass GroupNorm in f32 (avoids E[x^2]-mean^2 cancellation).
        mean = group_mean(jnp.sum(x, axis=0, keepdims=True))
        xc = x - mean
        var = group_mean(jnp.sum(xc * xc, axis=0, keepdims=True))
        inv = jax.lax.rsqrt(var + jnp.float32(eps))
        sc = inv * gamma_ref[...]
        scale_s[...] = sc                                        # folded GN scale
        shift_s[...] = beta_ref[...] - mean * sc                 # folded GN shift

    # ---- every row-chunk: normalize + projections (no (N,3C) f32 temp) ----
    r0 = pl.multiple_of(r * row_chunk, row_chunk)
    xr = x_ref[0, pl.ds(r0, row_chunk), :].astype(jnp.float32)   # (RC, C)
    h = (xr * scale_s[...] + shift_s[...]).astype(jnp.bfloat16)

    # Fused q/v: one (RC,C)x(C,2C) bf16 matmul, f32 accumulate.  The C**-0.5
    # softmax scale is already folded into the q columns/bias by the wrapper.
    qv = jnp.dot(h, wqv_ref[...], preferred_element_type=jnp.float32) + bqv_ref[...]
    q_ref[0] = qv[:, :C].astype(jnp.bfloat16)
    v_ref[0] = qv[:, C:].astype(jnp.bfloat16)

    # K stored transposed: kT = Wk @ h^T, produced directly as (C, RC) by
    # contracting the last dims (no explicit transpose / per-q-tile relayout).
    kt = jax.lax.dot_general(wk_ref[...], h, (((1,), (1,)), ((), ())),
                             preferred_element_type=jnp.float32) + bk_ref[...]
    kt_ref[0] = kt.astype(jnp.bfloat16)


# ---------------------------------------------------------------------------
# Kernel 2: query-tiled exact-softmax attention + proj_out + residual.
# ---------------------------------------------------------------------------
def spatial_attn_kernel(x_ref, q_ref, kt_ref, v_ref, wp_ref, bp_ref, o_ref,
                        *, bf16_exp):
    q = q_ref[0]                                                 # (TQ, C) bf16, pre-scaled
    # MXU-native (TQ,C)x(C,N): K was stored transposed by the prep kernel.
    scores = jnp.dot(q, kt_ref[0], preferred_element_type=jnp.float32)  # (TQ, N) f32

    m = jnp.max(scores, axis=-1, keepdims=True)
    if bf16_exp:
        # Small-C regime on v6e/v7x: bf16 EUP exp; row-sum accumulates in f32.
        p = jnp.exp((scores - m).astype(jnp.bfloat16))           # (TQ, N) bf16
        l = jnp.sum(p, axis=-1, keepdims=True, dtype=jnp.float32)
    else:
        p32 = jnp.exp(scores - m)
        l = jnp.sum(p32, axis=-1, keepdims=True)
        p = p32.astype(jnp.bfloat16)

    out = jnp.dot(p, v_ref[0], preferred_element_type=jnp.float32)       # (TQ, C)
    # Deferred softmax normalization on the small (TQ,C) tile.  approx=True adds
    # ~1e-3 rel. error on top of bf16 matmul error; set False for tight accuracy.
    out = out * pl.reciprocal(l, approx=True)

    # proj_out (1x1 conv) + residual (x is read per-tile only).
    out = jnp.dot(out.astype(jnp.bfloat16), wp_ref[...],
                  preferred_element_type=jnp.float32) + bp_ref[...]
    o_ref[0] = (x_ref[0].astype(jnp.float32) + out).astype(o_ref.dtype)


# ---------------------------------------------------------------------------
# Wrapper.
# ---------------------------------------------------------------------------
def spatial_self_attention(x_nchw, params, *, num_groups=32, eps=1e-6):
    B, C, H, W = x_nchw.shape
    assert C % num_groups == 0, "GroupNorm(32) requires C % num_groups == 0"
    N = H * W
    # Keep the caller's dtype (no forced f32 upcast round trip through HBM).
    x = jnp.transpose(x_nchw, (0, 2, 3, 1)).reshape(B, N, C)
    out_dtype = x.dtype

    # --- wrapper-side weight prep: transpose, fuse q/v, fold softmax scale ---
    scale = float(C) ** -0.5
    wqv_t = jnp.concatenate(
        [params["wq"].T * scale, params["wv"].T], axis=1).astype(jnp.bfloat16)  # (C, 2C)
    bqv = jnp.concatenate(
        [params["bq"] * scale, params["bv"]]).reshape(1, 2 * C).astype(jnp.float32)
    wk_b = params["wk"].astype(jnp.bfloat16)                     # (C, C), (out, in)
    bk_col = params["bk"].reshape(C, 1).astype(jnp.float32)      # (C, 1)
    wp_t = params["wp"].T.astype(jnp.bfloat16)                   # (C, C)
    bp = params["bp"].reshape(1, C).astype(jnp.float32)
    gamma = params["gamma"].reshape(1, C).astype(jnp.float32)
    beta = params["beta"].reshape(1, C).astype(jnp.float32)

    vmem_limit = _vmem_limit_bytes()

    # ---------------- kernel 1: GroupNorm + QKV projection (row-chunked) --------
    row_chunk = N
    for t in (512, 256, 128):
        if N % t == 0:
            row_chunk = t
            break
    # TODO(synk): if N is not a multiple of 128 the prep uses one whole-N chunk;
    # masked edge chunks would be needed only for very large non-aligned N.
    n_chunks = N // row_chunk

    prep = partial(groupnorm_qkv_kernel,
                   num_groups=num_groups, eps=eps, row_chunk=row_chunk)
    q, kt, v = pl.pallas_call(
        prep,
        out_shape=(jax.ShapeDtypeStruct((B, N, C), jnp.bfloat16),     # q (scaled)
                   jax.ShapeDtypeStruct((B, C, N), jnp.bfloat16),     # k^T
                   jax.ShapeDtypeStruct((B, N, C), jnp.bfloat16)),    # v
        grid=(B, n_chunks),
        in_specs=[
            pl.BlockSpec((1, N, C), lambda b, r: (b, 0, 0)),     # x resident per batch
            pl.BlockSpec((1, C), lambda b, r: (0, 0)),           # gamma
            pl.BlockSpec((1, C), lambda b, r: (0, 0)),           # beta
            pl.BlockSpec((C, 2 * C), lambda b, r: (0, 0)),       # [Wq^T*s | Wv^T]
            pl.BlockSpec((1, 2 * C), lambda b, r: (0, 0)),       # [bq*s | bv]
            pl.BlockSpec((C, C), lambda b, r: (0, 0)),           # Wk (out, in)
            pl.BlockSpec((C, 1), lambda b, r: (0, 0)),           # bk column
        ],
        out_specs=(
            pl.BlockSpec((1, row_chunk, C), lambda b, r: (b, r, 0)),
            pl.BlockSpec((1, C, row_chunk), lambda b, r: (b, 0, r)),
            pl.BlockSpec((1, row_chunk, C), lambda b, r: (b, r, 0)),
        ),
        scratch_shapes=[
            pltpu.VMEM((1, C), jnp.float32),                     # folded GN scale
            pltpu.VMEM((1, C), jnp.float32),                     # folded GN shift
        ],
        compiler_params=pltpu.CompilerParams(
            dimension_semantics=("parallel", "arbitrary"),
            vmem_limit_bytes=vmem_limit,
        ),
    )(x, gamma, beta, wqv_t, bqv, wk_b, bk_col)

    # ---------------- kernel 2: attention + proj_out + residual -----------------
    TQ = min(N, _max_q_tile())
    QT = pl.cdiv(N, TQ)                                          # edge tiles clipped

    attn = partial(spatial_attn_kernel,
                   bf16_exp=(C <= 128) and _bf16_eup_ok())
    y = pl.pallas_call(
        attn,
        out_shape=jax.ShapeDtypeStruct((B, N, C), out_dtype),
        grid=(B, QT),
        in_specs=[
            pl.BlockSpec((1, TQ, C), lambda b, qt: (b, qt, 0)),  # x tile (residual only)
            pl.BlockSpec((1, TQ, C), lambda b, qt: (b, qt, 0)),  # q tile (pre-scaled)
            pl.BlockSpec((1, C, N), lambda b, qt: (b, 0, 0)),    # K^T resident per batch
            pl.BlockSpec((1, N, C), lambda b, qt: (b, 0, 0)),    # V resident per batch
            pl.BlockSpec((C, C), lambda b, qt: (0, 0)),          # Wp^T
            pl.BlockSpec((1, C), lambda b, qt: (0, 0)),          # bp
        ],
        out_specs=pl.BlockSpec((1, TQ, C), lambda b, qt: (b, qt, 0)),
        compiler_params=pltpu.CompilerParams(
            # No cross-iteration scratch coupling -> both axes parallel so a v7x
            # megacore can split B*QT across both TensorCores.
            dimension_semantics=("parallel", "parallel"),
            vmem_limit_bytes=vmem_limit,
        ),
    )(x, q, kt, v, wp_t, bp)

    return jnp.transpose(y.reshape(B, H, W, C), (0, 3, 1, 2)).astype(x_nchw.dtype)


# ---------------------------------------------------------------------------
# Pure-JAX f32 reference mirroring the PyTorch forward (NCHW).
# ---------------------------------------------------------------------------
def reference_spatial_self_attention(x, params, *, num_groups=32, eps=1e-6):
    B, C, H, W = x.shape
    xg = x.reshape(B, num_groups, C // num_groups, H, W)
    mean = xg.mean(axis=(2, 3, 4), keepdims=True)
    var = xg.var(axis=(2, 3, 4), keepdims=True)
    hn = ((xg - mean) / jnp.sqrt(var + eps)).reshape(B, C, H, W)
    hn = hn * params["gamma"].reshape(1, C, 1, 1) + params["beta"].reshape(1, C, 1, 1)

    def conv1x1(t, w, b):
        return jnp.einsum('bchw,oc->bohw', t, w) + b.reshape(1, -1, 1, 1)

    q = conv1x1(hn, params["wq"], params["bq"])
    k = conv1x1(hn, params["wk"], params["bk"])
    v = conv1x1(hn, params["wv"], params["bv"])
    N = H * W
    qf = q.reshape(B, C, N).transpose(0, 2, 1)          # b (hw) c
    kf = k.reshape(B, C, N)                             # b c (hw)
    w_ = jnp.einsum('bij,bjk->bik', qf, kf) * (C ** -0.5)
    w_ = jax.nn.softmax(w_, axis=2)
    vf = v.reshape(B, C, N)
    h_ = jnp.einsum('bcj,bij->bci', vf, w_).reshape(B, C, H, W)
    h_ = conv1x1(h_, params["wp"], params["bp"])
    return x + h_


if __name__ == "__main__":
    # C must be a multiple of 32 (GroupNorm num_groups).
    C = 64
    key = jax.random.PRNGKey(0)
    keys = jax.random.split(key, 12)
    params = {
        "gamma": 1.0 + 0.1 * jax.random.normal(keys[1], (C,), dtype=jnp.float32),
        "beta": 0.1 * jax.random.normal(keys[2], (C,), dtype=jnp.float32),
        "wq": 0.1 * jax.random.normal(keys[3], (C, C), dtype=jnp.float32),
        "bq": 0.1 * jax.random.normal(keys[4], (C,), dtype=jnp.float32),
        "wk": 0.1 * jax.random.normal(keys[5], (C, C), dtype=jnp.float32),
        "bk": 0.1 * jax.random.normal(keys[6], (C,), dtype=jnp.float32),
        "wv": 0.1 * jax.random.normal(keys[7], (C, C), dtype=jnp.float32),
        "bv": 0.1 * jax.random.normal(keys[8], (C,), dtype=jnp.float32),
        "wp": 0.1 * jax.random.normal(keys[9], (C, C), dtype=jnp.float32),
        "bp": 0.1 * jax.random.normal(keys[10], (C,), dtype=jnp.float32),
    }

    # Config 1: B=2, 16x16 spatial (aligned, single or few q-tiles).
    # Config 2: B=1, 24x24 spatial (N=576) exercises the cdiv edge-tile path
    #           and the B=1 / megacore-friendly attention grid.
    for (B, H, W) in ((2, 16, 16), (1, 24, 24)):
        x = jax.random.normal(keys[0], (B, C, H, W), dtype=jnp.float32)
        y = spatial_self_attention(x, params)
        y = jax.block_until_ready(y)
        y_ref = reference_spatial_self_attention(x, params)
        assert y.shape == (B, C, H, W)
        # bf16 MXU operands (f32 accumulation) + approx reciprocal -> ~1e-2 diffs.
        assert jnp.allclose(y, y_ref, atol=5e-2, rtol=5e-2), \
            f"mismatch vs pure-JAX reference for shape {(B, C, H, W)}"

    print("KERNEL_OK")
</pallas_src>

<mosaic_0001>
module attributes {stable_mosaic.version = 11 : i64} {
  func.func @groupnorm_qkv_kernel(%arg0: i32, %arg1: i32, %arg2: memref<1x256x64xf32, #tpu.memory_space<vmem>>, %arg3: memref<1x64xf32, #tpu.memory_space<vmem>>, %arg4: memref<1x64xf32, #tpu.memory_space<vmem>>, %arg5: memref<64x128xbf16, #tpu.memory_space<vmem>>, %arg6: memref<1x128xf32, #tpu.memory_space<vmem>>, %arg7: memref<64x64xbf16, #tpu.memory_space<vmem>>, %arg8: memref<64x1xf32, #tpu.memory_space<vmem>>, %arg9: memref<1x256x64xbf16, #tpu.memory_space<vmem>>, %arg10: memref<1x64x256xbf16, #tpu.memory_space<vmem>>, %arg11: memref<1x256x64xbf16, #tpu.memory_space<vmem>>, %arg12: memref<1x64xf32, #tpu.memory_space<vmem>>, %arg13: memref<1x64xf32, #tpu.memory_space<vmem>>) attributes {dimension_semantics = [#tpu.dimension_semantics<parallel>, #tpu.dimension_semantics<arbitrary>], iteration_bounds = array<i64: 2, 1>, scalar_prefetch = 0 : i64, scratch_operands = 2 : i64, tpu.core_type = #tpu.core_type<tc>, window_params = [{transform_indices = @transform_0, window_bounds = array<i64: 1, 256, 64>}, {pipeline_mode = #tpu.pipeline_mode<synchronous>, transform_indices = @transform_1, window_bounds = array<i64: 1, 64>}, {pipeline_mode = #tpu.pipeline_mode<synchronous>, transform_indices = @transform_2, window_bounds = array<i64: 1, 64>}, {pipeline_mode = #tpu.pipeline_mode<synchronous>, transform_indices = @transform_3, window_bounds = array<i64: 64, 128>}, {pipeline_mode = #tpu.pipeline_mode<synchronous>, transform_indices = @transform_4, window_bounds = array<i64: 1, 128>}, {pipeline_mode = #tpu.pipeline_mode<synchronous>, transform_indices = @transform_5, window_bounds = array<i64: 64, 64>}, {pipeline_mode = #tpu.pipeline_mode<synchronous>, transform_indices = @transform_6, window_bounds = array<i64: 64, 1>}, {transform_indices = @transform_7, window_bounds = array<i64: 1, 256, 64>}, {transform_indices = @transform_8, window_bounds = array<i64: 1, 64, 256>}, {transform_indices = @transform_9, window_bounds = array<i64: 1, 256, 64>}]} {
    %c0_i32 = arith.constant 0 : i32
    %0 = arith.cmpi eq, %arg1, %c0_i32 : i32
    %1 = arith.extui %0 : i1 to i32
    %c0_i32_0 = arith.constant 0 : i32
    %2 = arith.cmpi ne, %1, %c0_i32_0 : i32
    scf.if %2 {
      %c0_24 = arith.constant 0 : index
      %c0_25 = arith.constant 0 : index
      %c0_26 = arith.constant 0 : index
      %39 = vector.load %arg2[%c0_24, %c0_25, %c0_26] : memref<1x256x64xf32, #tpu.memory_space<vmem>>, vector<1x256x64xf32>
      %40 = vector.shape_cast %39 : vector<1x256x64xf32> to vector<256x64xf32>
      %41 = tpu.iota {dimensions = array<i32: 1>} : vector<32x64xi32>
      %42 = tpu.iota {dimensions = array<i32: 0>} : vector<32x64xi32>
      %c2_i32 = arith.constant 2 : i32
      %43 = vector.broadcast %c2_i32 : i32 to vector<32x64xi32>
      %44 = arith.muli %42, %43 : vector<32x64xi32>
      %45 = arith.cmpi sge, %41, %44 : vector<32x64xi32>
      %c2_i32_27 = arith.constant 2 : i32
      %46 = vector.broadcast %c2_i32_27 : i32 to vector<32x64xi32>
      %47 = arith.addi %44, %46 : vector<32x64xi32>
      %48 = arith.cmpi slt, %41, %47 : vector<32x64xi32>
      %49 = arith.andi %45, %48 : vector<32x64xi1>
      %cst_28 = arith.constant dense<0.000000e+00> : vector<64xf32>
      %50 = vector.multi_reduction <add>, %40, %cst_28 [0] : vector<256x64xf32> to vector<64xf32>
      %51 = vector.shape_cast %50 : vector<64xf32> to vector<1x64xf32>
      %52 = vector.shape_cast %51 : vector<1x64xf32> to vector<1x64xf32>
      %53 = vector.broadcast %52 : vector<1x64xf32> to vector<32x64xf32>
      %cst_29 = arith.constant 0.000000e+00 : f32
      %54 = vector.broadcast %cst_29 : f32 to vector<32x64xf32>
      %55 = arith.select %49, %53, %54 : vector<32x64xi1>, vector<32x64xf32>
      %cst_30 = arith.constant dense<0.000000e+00> : vector<32xf32>
      %56 = vector.multi_reduction <add>, %55, %cst_30 [1] : vector<32x64xf32> to vector<32xf32>
      %57 = vector.shape_cast %56 : vector<32xf32> to vector<32x1xf32>
      %58 = vector.shape_cast %57 : vector<32x1xf32> to vector<32x1xf32>
      %59 = vector.broadcast %58 : vector<32x1xf32> to vector<32x64xf32>
      %cst_31 = arith.constant 0.000000e+00 : f32
      %60 = vector.broadcast %cst_31 : f32 to vector<32x64xf32>
      %61 = arith.select %49, %59, %60 : vector<32x64xi1>, vector<32x64xf32>
      %cst_32 = arith.constant dense<0.000000e+00> : vector<64xf32>
      %62 = vector.multi_reduction <add>, %61, %cst_32 [0] : vector<32x64xf32> to vector<64xf32>
      %63 = vector.shape_cast %62 : vector<64xf32> to vector<1x64xf32>
      %cst_33 = arith.constant 0.001953125 : f32
      %64 = vector.broadcast %cst_33 : f32 to vector<1x64xf32>
      %65 = arith.mulf %63, %64 : vector<1x64xf32>
      %66 = vector.broadcast %65 : vector<1x64xf32> to vector<256x64xf32>
      %67 = arith.subf %40, %66 : vector<256x64xf32>
      %68 = arith.mulf %67, %67 : vector<256x64xf32>
      %cst_34 = arith.constant dense<0.000000e+00> : vector<64xf32>
      %69 = vector.multi_reduction <add>, %68, %cst_34 [0] : vector<256x64xf32> to vector<64xf32>
      %70 = vector.shape_cast %69 : vector<64xf32> to vector<1x64xf32>
      %71 = vector.shape_cast %70 : vector<1x64xf32> to vector<1x64xf32>
      %72 = vector.broadcast %71 : vector<1x64xf32> to vector<32x64xf32>
      %cst_35 = arith.constant 0.000000e+00 : f32
      %73 = vector.broadcast %cst_35 : f32 to vector<32x64xf32>
      %74 = arith.select %49, %72, %73 : vector<32x64xi1>, vector<32x64xf32>
      %cst_36 = arith.constant dense<0.000000e+00> : vector<32xf32>
      %75 = vector.multi_reduction <add>, %74, %cst_36 [1] : vector<32x64xf32> to vector<32xf32>
      %76 = vector.shape_cast %75 : vector<32xf32> to vector<32x1xf32>
      %77 = vector.shape_cast %76 : vector<32x1xf32> to vector<32x1xf32>
      %78 = vector.broadcast %77 : vector<32x1xf32> to vector<32x64xf32>
      %cst_37 = arith.constant 0.000000e+00 : f32
      %79 = vector.broadcast %cst_37 : f32 to vector<32x64xf32>
      %80 = arith.select %49, %78, %79 : vector<32x64xi1>, vector<32x64xf32>
      %cst_38 = arith.constant dense<0.000000e+00> : vector<64xf32>
      %81 = vector.multi_reduction <add>, %80, %cst_38 [0] : vector<32x64xf32> to vector<64xf32>
      %82 = vector.shape_cast %81 : vector<64xf32> to vector<1x64xf32>
      %cst_39 = arith.constant 0.001953125 : f32
      %83 = vector.broadcast %cst_39 : f32 to vector<1x64xf32>
      %84 = arith.mulf %82, %83 : vector<1x64xf32>
      %cst_40 = arith.constant 9.99999997E-7 : f32
      %85 = vector.broadcast %cst_40 : f32 to vector<1x64xf32>
      %86 = arith.addf %84, %85 : vector<1x64xf32>
      %87 = math.rsqrt %86 : vector<1x64xf32>
      %c0_41 = arith.constant 0 : index
      %c0_42 = arith.constant 0 : index
      %88 = vector.load %arg3[%c0_41, %c0_42] : memref<1x64xf32, #tpu.memory_space<vmem>>, vector<1x64xf32>
      %89 = arith.mulf %87, %88 : vector<1x64xf32>
      %c0_43 = arith.constant 0 : index
      %c0_44 = arith.constant 0 : index
      %90 = vector.load %arg12[%c0_43, %c0_44] : memref<1x64xf32, #tpu.memory_space<vmem>>, vector<1x64xf32>
      tpu.vector_store %arg12[%c0_43, %c0_44], %89 {strides = array<i32>} : memref<1x64xf32, #tpu.memory_space<vmem>>, vector<1x64xf32>,
      %c0_45 = arith.constant 0 : index
      %c0_46 = arith.constant 0 : index
      %91 = vector.load %arg4[%c0_45, %c0_46] : memref<1x64xf32, #tpu.memory_space<vmem>>, vector<1x64xf32>
      %92 = arith.mulf %65, %89 : vector<1x64xf32>
      %93 = arith.subf %91, %92 : vector<1x64xf32>
      %c0_47 = arith.constant 0 : index
      %c0_48 = arith.constant 0 : index
      %94 = vector.load %arg13[%c0_47, %c0_48] : memref<1x64xf32, #tpu.memory_space<vmem>>, vector<1x64xf32>
      tpu.vector_store %arg13[%c0_47, %c0_48], %93 {strides = array<i32>} : memref<1x64xf32, #tpu.memory_space<vmem>>, vector<1x64xf32>,
    } else {
    }
    %c256_i32 = arith.constant 256 : i32
    %3 = arith.muli %arg1, %c256_i32 : i32
    %4 = tpu.assume_multiple %3, 256 : i32
    %c0 = arith.constant 0 : index
    %5 = arith.index_cast %4 : i32 to index
    %c0_1 = arith.constant 0 : index
    %6 = vector.load %arg2[%c0, %5, %c0_1] : memref<1x256x64xf32, #tpu.memory_space<vmem>>, vector<1x256x64xf32>
    %7 = vector.shape_cast %6 : vector<1x256x64xf32> to vector<256x64xf32>
    %c0_2 = arith.constant 0 : index
    %c0_3 = arith.constant 0 : index
    %8 = vector.load %arg12[%c0_2, %c0_3] : memref<1x64xf32, #tpu.memory_space<vmem>>, vector<1x64xf32>
    %9 = vector.broadcast %8 : vector<1x64xf32> to vector<256x64xf32>
    %10 = arith.mulf %7, %9 : vector<256x64xf32>
    %c0_4 = arith.constant 0 : index
    %c0_5 = arith.constant 0 : index
    %11 = vector.load %arg13[%c0_4, %c0_5] : memref<1x64xf32, #tpu.memory_space<vmem>>, vector<1x64xf32>
    %12 = vector.broadcast %11 : vector<1x64xf32> to vector<256x64xf32>
    %13 = arith.addf %10, %12 : vector<256x64xf32>
    %14 = arith.truncf %13 : vector<256x64xf32> to vector<256x64xbf16>
    %c0_6 = arith.constant 0 : index
    %c0_7 = arith.constant 0 : index
    %15 = vector.load %arg5[%c0_6, %c0_7] : memref<64x128xbf16, #tpu.memory_space<vmem>>, vector<64x128xbf16>
    %cst = arith.constant dense<0.000000e+00> : vector<256x128xf32>
    %16 = tpu.matmul %14, %15, %cst {dimension_numbers = #tpu.dot_dimension_numbers<[1], [0], [0], [1], [0, 0, 1, 1], [], []>} : vector<256x64xbf16>, vector<64x128xbf16>, vector<256x128xf32> -> vector<256x128xf32>
    %c0_8 = arith.constant 0 : index
    %c0_9 = arith.constant 0 : index
    %17 = vector.load %arg6[%c0_8, %c0_9] : memref<1x128xf32, #tpu.memory_space<vmem>>, vector<1x128xf32>
    %18 = vector.broadcast %17 : vector<1x128xf32> to vector<256x128xf32>
    %19 = arith.addf %16, %18 : vector<256x128xf32>
    %20 = vector.extract_strided_slice %19 {offsets = [0, 0], sizes = [256, 64], strides = [1, 1]} : vector<256x128xf32> to vector<256x64xf32>
    %21 = arith.truncf %20 : vector<256x64xf32> to vector<256x64xbf16>
    %c0_10 = arith.constant 0 : index
    %c0_11 = arith.constant 0 : index
    %c0_12 = arith.constant 0 : index
    %22 = vector.load %arg9[%c0_10, %c0_11, %c0_12] : memref<1x256x64xbf16, #tpu.memory_space<vmem>>, vector<1x256x64xbf16>
    %23 = vector.shape_cast %22 : vector<1x256x64xbf16> to vector<256x64xbf16>
    %24 = vector.shape_cast %21 : vector<256x64xbf16> to vector<1x256x64xbf16>
    tpu.vector_store %arg9[%c0_10, %c0_11, %c0_12], %24 {strides = array<i32>} : memref<1x256x64xbf16, #tpu.memory_space<vmem>>, vector<1x256x64xbf16>,
    %25 = vector.extract_strided_slice %19 {offsets = [0, 64], sizes = [256, 64], strides = [1, 1]} : vector<256x128xf32> to vector<256x64xf32>
    %26 = arith.truncf %25 : vector<256x64xf32> to vector<256x64xbf16>
    %c0_13 = arith.constant 0 : index
    %c0_14 = arith.constant 0 : index
    %c0_15 = arith.constant 0 : index
    %27 = vector.load %arg11[%c0_13, %c0_14, %c0_15] : memref<1x256x64xbf16, #tpu.memory_space<vmem>>, vector<1x256x64xbf16>
    %28 = vector.shape_cast %27 : vector<1x256x64xbf16> to vector<256x64xbf16>
    %29 = vector.shape_cast %26 : vector<256x64xbf16> to vector<1x256x64xbf16>
    tpu.vector_store %arg11[%c0_13, %c0_14, %c0_15], %29 {strides = array<i32>} : memref<1x256x64xbf16, #tpu.memory_space<vmem>>, vector<1x256x64xbf16>,
    %c0_16 = arith.constant 0 : index
    %c0_17 = arith.constant 0 : index
    %30 = vector.load %arg7[%c0_16, %c0_17] : memref<64x64xbf16, #tpu.memory_space<vmem>>, vector<64x64xbf16>
    %cst_18 = arith.constant dense<0.000000e+00> : vector<64x256xf32>
    %31 = tpu.matmul %30, %14, %cst_18 {dimension_numbers = #tpu.dot_dimension_numbers<[1], [1], [0], [0], [0, 0, 1, 0], [], []>} : vector<64x64xbf16>, vector<256x64xbf16>, vector<64x256xf32> -> vector<64x256xf32>
    %c0_19 = arith.constant 0 : index
    %c0_20 = arith.constant 0 : index
    %32 = vector.load %arg8[%c0_19, %c0_20] : memref<64x1xf32, #tpu.memory_space<vmem>>, vector<64x1xf32>
    %33 = vector.broadcast %32 : vector<64x1xf32> to vector<64x256xf32>
    %34 = arith.addf %31, %33 : vector<64x256xf32>
    %35 = arith.truncf %34 : vector<64x256xf32> to vector<64x256xbf16>
    %c0_21 = arith.constant 0 : index
    %c0_22 = arith.constant 0 : index
    %c0_23 = arith.constant 0 : index
    %36 = vector.load %arg10[%c0_21, %c0_22, %c0_23] : memref<1x64x256xbf16, #tpu.memory_space<vmem>>, vector<1x64x256xbf16>
    %37 = vector.shape_cast %36 : vector<1x64x256xbf16> to vector<64x256xbf16>
    %38 = vector.shape_cast %35 : vector<64x256xbf16> to vector<1x64x256xbf16>
    tpu.vector_store %arg10[%c0_21, %c0_22, %c0_23], %38 {strides = array<i32>} : memref<1x64x256xbf16, #tpu.memory_space<vmem>>, vector<1x64x256xbf16>,
    return
  }
  func.func @transform_0(%arg0: i32, %arg1: i32) -> (i32, i32, i32) {
    %c0_i32 = arith.constant 0 : i32
    %c0_i32_0 = arith.constant 0 : i32
    %c0_i32_1 = arith.constant 0 : i32
    return %arg0, %c0_i32, %c0_i32_0 : i32, i32, i32
  }
  func.func @transform_1(%arg0: i32, %arg1: i32) -> (i32, i32) {
    %c0_i32 = arith.constant 0 : i32
    %c0_i32_0 = arith.constant 0 : i32
    %c0_i32_1 = arith.constant 0 : i32
    return %c0_i32, %c0_i32_0 : i32, i32
  }
  func.func @transform_2(%arg0: i32, %arg1: i32) -> (i32, i32) {
    %c0_i32 = arith.constant 0 : i32
    %c0_i32_0 = arith.constant 0 : i32
    %c0_i32_1 = arith.constant 0 : i32
    return %c0_i32, %c0_i32_0 : i32, i32
  }
  func.func @transform_3(%arg0: i32, %arg1: i32) -> (i32, i32) {
    %c0_i32 = arith.constant 0 : i32
    %c0_i32_0 = arith.constant 0 : i32
    %c0_i32_1 = arith.constant 0 : i32
    return %c0_i32, %c0_i32_0 : i32, i32
  }
  func.func @transform_4(%arg0: i32, %arg1: i32) -> (i32, i32) {
    %c0_i32 = arith.constant 0 : i32
    %c0_i32_0 = arith.constant 0 : i32
    %c0_i32_1 = arith.constant 0 : i32
    return %c0_i32, %c0_i32_0 : i32, i32
  }
  func.func @transform_5(%arg0: i32, %arg1: i32) -> (i32, i32) {
    %c0_i32 = arith.constant 0 : i32
    %c0_i32_0 = arith.constant 0 : i32
    %c0_i32_1 = arith.constant 0 : i32
    return %c0_i32, %c0_i32_0 : i32, i32
  }
  func.func @transform_6(%arg0: i32, %arg1: i32) -> (i32, i32) {
    %c0_i32 = arith.constant 0 : i32
    %c0_i32_0 = arith.constant 0 : i32
    %c0_i32_1 = arith.constant 0 : i32
    return %c0_i32, %c0_i32_0 : i32, i32
  }
  func.func @transform_7(%arg0: i32, %arg1: i32) -> (i32, i32, i32) {
    %c0_i32 = arith.constant 0 : i32
    %c0_i32_0 = arith.constant 0 : i32
    return %arg0, %arg1, %c0_i32 : i32, i32, i32
  }
  func.func @transform_8(%arg0: i32, %arg1: i32) -> (i32, i32, i32) {
    %c0_i32 = arith.constant 0 : i32
    %c0_i32_0 = arith.constant 0 : i32
    return %arg0, %c0_i32, %arg1 : i32, i32, i32
  }
  func.func @transform_9(%arg0: i32, %arg1: i32) -> (i32, i32, i32) {
    %c0_i32 = arith.constant 0 : i32
    %c0_i32_0 = arith.constant 0 : i32
    return %arg0, %arg1, %c0_i32 : i32, i32, i32
  }
}

</mosaic_0001>

<bundles_post_ra>
// kernel: tpu_custom_call.1
= control target key start
LH: loop header
LB: loop body
LE: loop exit
PB: predicated region body
PF: predicated region fallthrough
CT: control target
= control target key end

     0   :  { %s3935_s0 = inlined_call_operand.hbm [shape: f32[2,256,64], index: 0, kind: input, shape index: {}]   ;;  %s3936_s1 = inlined_call_operand.hbm [shape: f32[1,64], index: 1, kind: input, shape index: {}]   ;;  %s3937_s2 = inlined_call_operand.hbm [shape: f32[1,64], index: 2, kind: input, shape index: {}]   ;;  %s3938_s3 = inlined_call_operand.hbm [shape: bf16[64,128], index: 3, kind: input, shape index: {}]   ;;  %s3939_s4 = inlined_call_operand.hbm [shape: f32[1,128], index: 4, kind: input, shape index: {}]   ;;  %s3940_s5 = inlined_call_operand.hbm [shape: bf16[64,64], index: 5, kind: input, shape index: {}]   ;;  %s3941_s6 = inlined_call_operand.hbm [shape: f32[64,1], index: 6, kind: input, shape index: {}]   ;;  %s3942_s7 = inlined_call_operand.hbm [shape: bf16[2,256,64], index: 7, kind: output, shape index: {0}]   ;;  %s3943_s8 = inlined_call_operand.hbm [shape: bf16[2,64,256], index: 8, kind: output, shape index: {1}]   ;;  %s3944_s9 = inlined_call_operand.hbm [shape: bf16[2,256,64], index: 9, kind: output, shape index: {2}]  }
   0x1   :  { %3955 = sst [smem:[#allocation26_spill]] %s3936_s1 }
   0x2   :  { %3956 = sst [smem:[#allocation27_spill]] %s3938_s3 }
   0x3   :  { %3957 = sst [smem:[#allocation28_spill]] %s3943_s8 }
   0x4   :  { %3958 = sst [smem:[#allocation29_spill]] %s3944_s9 }
   0x5   :  { %15 = vsyncpa [#allocation5], 0 }
   0x6   :  { %17 = vsyncpa [#allocation5 + $0x1], 0 }
   0x7   :  { %18 = vsyncpa [#allocation8], 0 }
   0x8   :  { %19 = vsyncpa [#allocation11], 0 }
   0x9   :  { %20 = vsyncpa [#allocation14], 0 }
   0xa   :  { %21 = vsyncpa [#allocation6], 0 }
   0xb   :  { %23 = vsyncpa [#allocation6 + $0x1], 0 }
   0xc   :  { %24 = vsyncpa [#allocation18], 0 }
   0xd   :  { %26 = vsyncpa [#allocation18 + $0x1], 0  ;;  %s2814_s30 = smov 0   ;;  %s2816_s10 = smov 0  }
   0xe   :  { %s2818_s11 = smov 0   ;;  %s2820_s12 = smov 0  }
   0xf   :  { %s2822_s13 = smov 0   ;;  %s2824_s14 = smov 0  }
  0x10 LB: > { %s2845_s15 = sadd.s32 4294967295, %s2743_s14   ;;  %p1973_p0 = scmp.ge.s32.totalorder %s2743_s14, 1  ;;  %s2743_s14 = sphi %s2824_s14, %s32_s14   ;;  %s2739_s13 = sphi %s2822_s13, %s3999_s13   ;;  %s2735_s12 = sphi %s2820_s12, %s3998_s12   ;;  %s2731_s11 = sphi %s2818_s11, %s3997_s11   ;;  %s2727_s10 = sphi %s2816_s10, %s3996_s10   ;;  %s2723_s30 = sphi %s2814_s30, %s3995_s30  }
  0x11   : > { %p3945_p1 = scmp.eq.s32.totalorder %s2845_s15, 0  ;;  %p285_p2 = scmp.lt.s32.totalorder %s2743_s14, 3 }
  0x12   : > { %s2745_s17 = smov [#allocation7]   ;;  %s2746_s19 = smov [#allocation10]  }
  0x13   : > { %p2850_p3 = pnand %p1973_p0, %p285_p2  ;;  %s298_s18 = sshll.u32 %s2745_s17, 4  ;;  %s299_s18 = int_to_ptr.vmem [resolvable:$true] %s298_s18 }
  0x14   : > { %s319_s20 = sshll.u32 %s2746_s19, 4  ;;  %s2747_s22 = smov [#allocation13]   ;;  %s2863_s20 = int_to_ptr.vmem [resolvable:$true] %s319_s20 }
  0x15   : > { %s3959_s16 = scalar_select %p2850_p3, 1, 0 }
  0x16   : > { %p2269_p5 = pneg %p2850_p3  ;;  %s2865_s23 = sshll.u32 %s2747_s22, 4  ;;  %s344_s23 = int_to_ptr.vmem [resolvable:$true] %s2865_s23 }
  0x17   : > { %s3961_s1 = sld [smem:[#allocation26_spill]] }
  0x18   : > { %p2859_p6 = pnand %p2269_p5, %p3945_p1 }
  0x1a   : > { %p2875_p8 = pneg %p2859_p6 }
  0x1d   : > { %s2391_s26 = scalar_lea.hbm %s3961_s1, 16 }
  0x1e   : > { %p2392_p7 = scmp.ne.s32.totalorder %s3961_s1, %s2391_s26  ;;  %p2398_p11 = scmp.lt.u32.totalorder %s2391_s26, %s3961_s1 }
  0x20   : > { %p2394_p9 = pnand %p2875_p8, %p2392_p7 }
  0x22   : > { %p2395_p10 = pneg %p2394_p9 }
  0x24   : > { %p2400_p12 = pnand %p2398_p11, %p2395_p10 }
  0x26   : > { %2403 = shalt.err (!%p2400_p12)
}
  0x27   : > { %s2404_s22 = scalar_lea.vmem %s299_s18, 16  ;;  %s2411_s24 = scalar_lea.vmem %s299_s18, 32 }
  0x28   : > { %p2405_p13 = scmp.ne.s32.totalorder %s299_s18, %s2404_s22  ;;  %p2412_p5 = scmp.lt.s32.totalorder %s299_s18, %s299_s18 }
  0x29   : > { %p2413_p4 = scmp.lt.s32.totalorder %s2411_s24, %s2404_s22 }
  0x2a   : > { %p2407_p0 = pnand %p2405_p13, %p2875_p8 }
  0x2b   : > { %p2414_p1 = por %p2413_p4, %p2412_p5 }
  0x2c   : > { %p2408_p2 = pneg %p2407_p0 }
  0x2e   : > { %p2415_p3 = pnand %p2414_p1, %p2408_p2 }
  0x30   : > { %2418 = shalt.err (!%p2415_p3)
}
  0x31   : > { %2272 = dma.hbm_to_vmem [thread:$0]  (!%p2859_p6), %s3961_s1, 16, %s299_s18, [#allocation8]  }
  0x32   : > { %s3963_s3 = sld [smem:[#allocation27_spill]] }
  0x38   : > { %s2419_s17 = scalar_lea.hbm %s3963_s3, 512 }
  0x39   : > { %p2420_p7 = scmp.ne.s32.totalorder %s3963_s3, %s2419_s17  ;;  %p2426_p1 = scmp.lt.u32.totalorder %s2419_s17, %s3963_s3 }
  0x3b   : > { %p2422_p9 = pnand %p2420_p7, %p2875_p8 }
  0x3d   : > { %p2423_p4 = pneg %p2422_p9 }
  0x3f   : > { %p2428_p3 = pnand %p2426_p1, %p2423_p4 }
  0x41   : > { %2431 = shalt.err (!%p2428_p3)
}
  0x42   : > { %s2432_s18 = scalar_lea.vmem %s2863_s20, 512  ;;  %p2440_p13 = scmp.lt.s32.totalorder %s2863_s20, %s2863_s20 }
  0x43   : > { %p2433_p10 = scmp.ne.s32.totalorder %s2863_s20, %s2432_s18  ;;  %p2441_p0 = scmp.lt.s32.totalorder %s2432_s18, %s2432_s18 }
  0x45   : > { %p2435_p11 = pnand %p2433_p10, %p2875_p8  ;;  %p2442_p2 = por %p2441_p0, %p2440_p13 }
  0x47   : > { %p2436_p12 = pneg %p2435_p11 }
  0x49   : > { %p2443_p5 = pnand %p2442_p2, %p2436_p12 }
  0x4b   : > { %2446 = shalt.err (!%p2443_p5)
}
  0x4c   : > { %s2748_s9 = smov 64   ;;  %s2749_s25 = smov 4  }
  0x4d   : > { %2278 = dma.hbm_to_vmem [thread:$0]  (!%p2859_p6), %s3963_s3, 512, %s2863_s20, [#allocation11], %s2748_s9, %s2748_s9, %s2749_s25  }
  0x4e   : > { %s2447_s19 = scalar_lea.hbm %s3940_s5, 512 }
  0x4f   : > { %p2448_p7 = scmp.ne.s32.totalorder %s3940_s5, %s2447_s19  ;;  %p2454_p1 = scmp.lt.u32.totalorder %s2447_s19, %s3940_s5 }
  0x51   : > { %p2450_p9 = pnand %p2448_p7, %p2875_p8 }
  0x53   : > { %p2451_p4 = pneg %p2450_p9 }
  0x55   : > { %p2456_p3 = pnand %p2454_p1, %p2451_p4 }
  0x57   : > { %2459 = shalt.err (!%p2456_p3)
}
  0x58   : > { %s2460_s27 = scalar_lea.vmem %s344_s23, 512  ;;  %p2468_p13 = scmp.lt.s32.totalorder %s344_s23, %s344_s23 }
  0x59   : > { %p2461_p10 = scmp.ne.s32.totalorder %s344_s23, %s2460_s27  ;;  %p2469_p0 = scmp.lt.s32.totalorder %s2460_s27, %s2460_s27 }
  0x5b   : > { %p2463_p11 = pnand %p2461_p10, %p2875_p8  ;;  %p2470_p2 = por %p2469_p0, %p2468_p13 }
  0x5d   : > { %p2464_p12 = pneg %p2463_p11 }
  0x5f   : > { %p2471_p5 = pnand %p2470_p2, %p2464_p12 }
  0x61   : > { %2474 = shalt.err (!%p2471_p5)
}
  0x62   : > { %2284 = dma.hbm_to_vmem [thread:$0]  (!%p2859_p6), %s3940_s5, 512, %s344_s23, [#allocation14], %s2748_s9, %s2748_s9, %s2749_s25  }
  0x63   : > { %s2750_s1 = smov [#allocation9]   ;;  %s2751_s17 = smov [#allocation12]  }
  0x64   : > { %s309_s28 = sshll.u32 %s2750_s1, 4  ;;  %s333_s19 = sshll.u32 %s2751_s17, 4  ;;  %s310_s28 = int_to_ptr.vmem [resolvable:$true] %s309_s28  ;;  %s334_s19 = int_to_ptr.vmem [resolvable:$true] %s333_s19 }
  0x65   : > { %s2475_s18 = scalar_lea.hbm %s3937_s2, 16 }
  0x66   : > { %p2476_p7 = scmp.ne.s32.totalorder %s3937_s2, %s2475_s18  ;;  %p2482_p1 = scmp.lt.u32.totalorder %s2475_s18, %s3937_s2 }
  0x68   : > { %p2478_p9 = pnand %p2476_p7, %p2875_p8 }
  0x6a   : > { %p2479_p4 = pneg %p2478_p9 }
  0x6c   : > { %p2484_p3 = pnand %p2482_p1, %p2479_p4 }
  0x6e   : > { %2487 = shalt.err (!%p2484_p3)
}
  0x6f   : > { %s2488_s23 = scalar_lea.vmem %s310_s28, 16  ;;  %s2495_s9 = scalar_lea.vmem %s310_s28, 32 }
  0x70   : > { %p2489_p10 = scmp.ne.s32.totalorder %s310_s28, %s2488_s23  ;;  %p2496_p13 = scmp.lt.s32.totalorder %s310_s28, %s310_s28 }
  0x71   : > { %p2497_p0 = scmp.lt.s32.totalorder %s2495_s9, %s2488_s23 }
  0x72   : > { %p2491_p11 = pnand %p2489_p10, %p2875_p8 }
  0x73   : > { %p2498_p2 = por %p2497_p0, %p2496_p13 }
  0x74   : > { %p2492_p12 = pneg %p2491_p11 }
  0x76   : > { %p2499_p5 = pnand %p2498_p2, %p2492_p12 }
  0x78   : > { %2502 = shalt.err (!%p2499_p5)
}
  0x79   : > { %2275 = dma.hbm_to_vmem [thread:$0]  (!%p2859_p6), %s3937_s2, 16, %s310_s28, [#allocation8]  }
  0x7a   : > { %s2503_s1 = scalar_lea.hbm %s3939_s4, 16 }
  0x7b   : > { %p2504_p7 = scmp.ne.s32.totalorder %s3939_s4, %s2503_s1  ;;  %p2510_p1 = scmp.lt.u32.totalorder %s2503_s1, %s3939_s4 }
  0x7d   : > { %p2506_p9 = pnand %p2504_p7, %p2875_p8 }
  0x7f   : > { %p2507_p4 = pneg %p2506_p9 }
  0x81   : > { %p2512_p3 = pnand %p2510_p1, %p2507_p4 }
  0x83   : > { %2515 = shalt.err (!%p2512_p3)
}
  0x84   : > { %s2516_s27 = scalar_lea.vmem %s334_s19, 16  ;;  %s2523_s28 = scalar_lea.vmem %s334_s19, 32 }
  0x85   : > { %p2517_p10 = scmp.ne.s32.totalorder %s334_s19, %s2516_s27  ;;  %p2524_p13 = scmp.lt.s32.totalorder %s334_s19, %s334_s19 }
  0x86   : > { %p2525_p0 = scmp.lt.s32.totalorder %s2523_s28, %s2516_s27 }
  0x87   : > { %p2519_p11 = pnand %p2517_p10, %p2875_p8 }
  0x88   : > { %p2526_p2 = por %p2525_p0, %p2524_p13 }
  0x89   : > { %p2520_p12 = pneg %p2519_p11 }
  0x8b   : > { %p2527_p5 = pnand %p2526_p2, %p2520_p12 }
  0x8d   : > { %2530 = shalt.err (!%p2527_p5)
}
  0x8e   : > { %2281 = dma.hbm_to_vmem [thread:$0]  (!%p2859_p6), %s3939_s4, 16, %s334_s19, [#allocation11]  }
  0x8f   : > { %s2752_s9 = smov [#allocation15]   ;;  %s2531_s26 = scalar_lea.hbm %s3941_s6, 1024 }
  0x90   : > { %s356_s3 = sshll.u32 %s2752_s9, 4  ;;  %p2532_p7 = scmp.ne.s32.totalorder %s3941_s6, %s2531_s26  ;;  %s357_s3 = int_to_ptr.vmem [resolvable:$true] %s356_s3 }
  0x91   : > { %p2538_p1 = scmp.lt.u32.totalorder %s2531_s26, %s3941_s6 }
  0x92   : > { %p2534_p9 = pnand %p2532_p7, %p2875_p8 }
  0x94   : > { %p2535_p4 = pneg %p2534_p9 }
  0x96   : > { %p2540_p3 = pnand %p2538_p1, %p2535_p4 }
  0x98   : > { %2543 = shalt.err (!%p2540_p3)
}
  0x99   : > { %s2544_s19 = scalar_lea.vmem %s357_s3, 1024  ;;  %p2552_p13 = scmp.lt.s32.totalorder %s357_s3, %s357_s3 }
  0x9a   : > { %p2545_p10 = scmp.ne.s32.totalorder %s357_s3, %s2544_s19  ;;  %p2553_p0 = scmp.lt.s32.totalorder %s2544_s19, %s2544_s19 }
  0x9c   : > { %p2547_p11 = pnand %p2545_p10, %p2875_p8  ;;  %p2554_p2 = por %p2553_p0, %p2552_p13 }
  0x9e   : > { %p2548_p12 = pneg %p2547_p11 }
  0xa0   : > { %p2555_p5 = pnand %p2554_p2, %p2548_p12 }
  0xa2   : > { %2558 = shalt.err (!%p2555_p5)
}
  0xa3   : > { %s3950_s18 = smov 128   ;;  %s2754_s29 = smov 8  }
  0xa4   : > { %2287 = dma.hbm_to_vmem [thread:$0]  (!%p2859_p6), %s3941_s6, 1024, %s357_s3, [#allocation14], %s3950_s18, %s3950_s18, %s2754_s29  }
  0xa5   : > { %s3949_s20 = sadd.s32 4294967294, %s2743_s14   ;;  %s44_s23 = sadd.s32 1, %s2739_s13 }
  0xa6   : > { %p46_p8 = scmp.ge.s32.totalorder %s44_s23, 2  ;;  %s51_s9 = sadd.s32 1, %s2731_s11 }
  0xa7   : > { %p58_p7 = scmp.ne.s32.totalorder %s2731_s11, %s2727_s10  ;;  %p59_p9 = scmp.eq.s32.totalorder %s2743_s14, 0 }
  0xa8   : > { %s4001_s23 = smov (%p46_p8, %s44_s23), 0  ;;  %p64_p1 = scmp.ne.s32.totalorder %s2727_s10, %s2723_s30 }
  0xa9   : > { %p2998_p4 = por %p59_p9, %p58_p7  ;;  %s48_s3 = ssub.s32 %s2739_s13, %s4001_s23 }
  0xaa   : > { %p216_p6 = scmp.eq.s32.totalorder %s2845_s15, 1  ;;  %p49_p3 = scmp.eq.s32.totalorder %s48_s3, 0 }
  0xab   : > { %p3965_p10 = scmp.eq.s32.totalorder %s2845_s15, 0  ;;  %p222_p13 = scmp.eq.s32.totalorder %s3949_s20, 1 }
  0xac   : > { %p3013_p12 = por %p216_p6, %p58_p7  ;;  %p2308_p2 = scmp.lt.s32.totalorder %s2743_s14, 2 }
  0xad   : > { %p3009_p11 = por %p3965_p10, %p64_p1  ;;  %p3022_p0 = por %p222_p13, %p64_p1 }
  0xae   : > { %s3967_s8 = scalar_select %p3013_p12, 1, 0 }
  0xaf   : > { %s3020_s26 = scalar_select %p49_p3, %s2731_s11, %s51_s9  }
  0xb0   : > { %s3968_s1 = scalar_select %p3022_p0, 1, 0 }
  0xb1   : > { %s370_s17 = sand.u32 1, %s2731_s11   ;;  %s2077_s22 = sshll.u32 %s2739_s13, 12 }
  0xb2   : > { %s1981_s24 = sshll.u32 %s370_s17, 8  ;;  %s3032_s28 = scalar_lea.hbm %s3935_s0, %s2077_s22 }
  0xb3   : > { %s374_s3 = scalar_lea.vmem [#allocation4], %s1981_s24  ;;  %p3036_p5 = pnand %p2308_p2, %p2998_p4 }
  0xb4   : > { %s381_s9 = sshll.u32 %s374_s3, 4  ;;  %s3042_s18 = scalar_lea.sflag [#allocation5], %s370_s17  ;;  %s3040_s9 = int_to_ptr.vmem [resolvable:$true] %s381_s9 }
  0xb5   : > { %s2559_s19 = scalar_lea.hbm %s3032_s28, 4096  ;;  %p2561_p7 = pneg %p3036_p5 }
  0xb6   : > { %p2560_p8 = scmp.ne.s32.totalorder %s3032_s28, %s2559_s19  ;;  %s2564_s24 = scalar_lea.hbm %s3935_s0, 8192 }
  0xb7   : > { %p2565_p4 = scmp.lt.u32.totalorder %s3032_s28, %s3935_s0  ;;  %p2566_p6 = scmp.lt.u32.totalorder %s2564_s24, %s2559_s19 }
  0xb8   : > { %p2562_p9 = pnand %p2561_p7, %p2560_p8  ;;  %p2568_p10 = scmp.lt.u32.totalorder %s2559_s19, %s3032_s28 }
  0xb9   : > { %p2567_p3 = por %p2566_p6, %p2565_p4 }
  0xba   : > { %p2563_p1 = pneg %p2562_p9 }
  0xbb   : > { %p2569_p13 = por %p2568_p10, %p2567_p3 }
  0xbd   : > { %p2570_p2 = pnand %p2569_p13, %p2563_p1 }
  0xbf   : > { %2573 = shalt.err (!%p2570_p2)
}
  0xc0   : > { %s2574_s17 = scalar_lea.vmem %s3040_s9, 4096  ;;  %s2755_s22 = smov [#allocation4]  }
  0xc1   : > { %p2575_p8 = scmp.ne.s32.totalorder %s3040_s9, %s2574_s17  ;;  %s2579_s21 = sshll.u32 %s2755_s22, 4  ;;  %s2580_s21 = int_to_ptr.vmem [resolvable:$false] %s2579_s21 }
  0xc2   : > { %s2581_s27 = scalar_lea.vmem %s2580_s21, 8192  ;;  %p2582_p12 = scmp.lt.s32.totalorder %s3040_s9, %s2580_s21 }
  0xc3   : > { %p2577_p9 = pnand %p2575_p8, %p2561_p7  ;;  %p2583_p4 = scmp.lt.s32.totalorder %s2581_s27, %s2574_s17 }
  0xc5   : > { %p2578_p0 = pneg %p2577_p9  ;;  %p2584_p6 = por %p2583_p4, %p2582_p12 }
  0xc7   : > { %p2585_p3 = pnand %p2584_p6, %p2578_p0 }
  0xc9   : > { %2588 = shalt.err (!%p2585_p3)
}
  0xca   : > { %s3970_s19 = smov 128   ;;  %p3971_p7 = scmp.ne.s32.totalorder %s3959_s16, 0 }
  0xcb   : > { %2291 = dma.hbm_to_vmem [thread:$0]  (!%p3036_p5), %s3032_s28, 4096, %s3040_s9, %s3042_s18, %s3970_s19, %s3970_s19, %s2754_s29  }
  0xcc   : > { %393 = sbr.rel (%p3971_p7) target bundleno = 1170 (0x492), region = 48  ;;  %s3076_s24 = sand.u32 (!%p3971_p7), 1, %s2727_s10  }
  0xcd   : > { %s1985_s3 = sshll.u32 (!%p3971_p7), %s3076_s24, 8  ;;  %s396_s17 = scalar_lea.sflag (!%p3971_p7), [#allocation5], %s3076_s24 }
  0xce   : > { %s3080_s22 = scalar_lea.vmem (!%p3971_p7), [#allocation4], %s1985_s3 }
  0xd3   : > { %2698 = dma.done.wait (%p3009_p11), %s396_s17, 4096  }
  0xd4   : > { %2700 = vsyncadd (%p3009_p11), %s396_s17, 4294963200  ;;  %p3972_p12 = scmp.eq.s32.totalorder %s2845_s15, 0 }
  0xd6   : > { %2702 = dma.done.wait (%p3972_p12), [#allocation8], 32   ;;  %p3973_p0 = pmov %p3972_p12 }
  0xd8   : > { %2704 = vsyncadd (%p3973_p0), [#allocation8], 4294967264  ;;  %p3974_p5 = pmov %p3973_p0 }
  0xd9   : > { %p3975_p1 = pmov %p3973_p0 }
  0xda   : > { %2706 = dma.done.wait (%p3974_p5), [#allocation11], 528  }
  0xdb   : > { %2708 = vsyncadd (%p3975_p1), [#allocation11], 4294966768  ;;  %p3976_p10 = pmov %p3973_p0 }
  0xdc   : > { %p3977_p13 = pmov %p3973_p0 }
  0xdd   : > { %2710 = dma.done.wait (%p3976_p10), [#allocation14], 1536  }
  0xde   : > { %2712 = vsyncadd (%p3977_p13), [#allocation14], 4294965760  ;;  %vm535_vm0 = vcmask 523264   ;;  %v3099_v0 = vld [vmem:[%s3080_s22] sm:$0xff]  ;;  %v3102_v1 = vld [vmem:[%s3080_s22 + $0x8] sm:$0xff]  ;;  %vm810_vm13 = vcmask 516096  }
  0xdf   : > { %v3105_v2 = vld [vmem:[%s3080_s22 + $0x10] sm:$0xff]  ;;  %v3108_v3 = vld [vmem:[%s3080_s22 + $0x18] sm:$0xff]  ;;  %v536_v4 = vsel %vm535_vm0, %v3099_v0, 0.0  ;;  %v537_v5 = vsel %vm535_vm0, %v3102_v1, 0.0  ;;  %v3117_v7 = vld [vmem:[%s3080_s22 + $0x20] sm:$0xff]  ;;  %s3953_s16 = sshll.u32 %s3076_s24, 7 }
  0xe0   : > { %v539_v6 = vsel %vm535_vm0, %v3105_v2, 0.0  ;;  %v538_v8 = vadd.f32 %v537_v5, %v536_v4  ;;  %v541_v9 = vsel %vm535_vm0, %v3108_v3, 0.0  ;;  %v3122_v10 = vld [vmem:[%s3080_s22 + $0x28] sm:$0xff]  ;;  %v543_v12 = vsel %vm535_vm0, %v3117_v7, 0.0  ;;  %v3127_v13 = vld [vmem:[%s3080_s22 + $0x30] sm:$0xff]  ;;  %v3132_v16 = vld [vmem:[%s3080_s22 + $0x38] sm:$0xff] }
  0xe1   : > { %v545_v15 = vsel %vm535_vm0, %v3122_v10, 0.0  ;;  %v3135_v18 = vld [vmem:[%s3080_s22 + $0x40] sm:$0xff]  ;;  %v547_v19 = vsel %vm535_vm0, %v3127_v13, 0.0  ;;  %v3140_v21 = vld [vmem:[%s3080_s22 + $0x48] sm:$0xff]  ;;  %v549_v22 = vsel %vm535_vm0, %v3132_v16, 0.0  ;;  %v3145_v23 = vld [vmem:[%s3080_s22 + $0x50] sm:$0xff] }
  0xe2   : > { %v540_v11 = vadd.f32 %v539_v6, %v538_v8  ;;  %v551_v25 = vsel %vm535_vm0, %v3135_v18, 0.0  ;;  %v553_v27 = vsel %vm535_vm0, %v3140_v21, 0.0  ;;  %v3152_v28 = vld [vmem:[%s3080_s22 + $0x58] sm:$0xff]  ;;  %v555_v30 = vsel %vm535_vm0, %v3145_v23, 0.0  ;;  %v3157_v31 = vld [vmem:[%s3080_s22 + $0x60] sm:$0xff]  ;;  %v3162_v34 = vld [vmem:[%s3080_s22 + $0x68] sm:$0xff] }
  0xe3   : > { %v557_v33 = vsel %vm535_vm0, %v3152_v28, 0.0  ;;  %v559_v36 = vsel %vm535_vm0, %v3157_v31, 0.0  ;;  %v3167_v37 = vld [vmem:[%s3080_s22 + $0x70] sm:$0xff]  ;;  %v561_v39 = vsel %vm535_vm0, %v3162_v34, 0.0  ;;  %v3172_v40 = vld [vmem:[%s3080_s22 + $0x78] sm:$0xff]  ;;  %v3177_v43 = vld [vmem:[%s3080_s22 + $0x80] sm:$0xff] }
  0xe4   : > { %v542_v14 = vadd.f32 %v541_v9, %v540_v11  ;;  %v563_v42 = vsel %vm535_vm0, %v3167_v37, 0.0  ;;  %v565_v45 = vsel %vm535_vm0, %v3172_v40, 0.0  ;;  %v3182_v46 = vld [vmem:[%s3080_s22 + $0x88] sm:$0xff]  ;;  %v567_v48 = vsel %vm535_vm0, %v3177_v43, 0.0  ;;  %v3187_v49 = vld [vmem:[%s3080_s22 + $0x90] sm:$0xff]  ;;  %v3192_v52 = vld [vmem:[%s3080_s22 + $0x98] sm:$0xff] }
  0xe5   : > { %v569_v51 = vsel %vm535_vm0, %v3182_v46, 0.0  ;;  %v571_v54 = vsel %vm535_vm0, %v3187_v49, 0.0  ;;  %v3197_v55 = vld [vmem:[%s3080_s22 + $0xa0] sm:$0xff]  ;;  %v573_v57 = vsel %vm535_vm0, %v3192_v52, 0.0  ;;  %v3202_v58 = vld [vmem:[%s3080_s22 + $0xa8] sm:$0xff]  ;;  %v3207_v61 = vld [vmem:[%s3080_s22 + $0xb0] sm:$0xff] }
  0xe6   : > { %v544_v17 = vadd.f32 %v543_v12, %v542_v14  ;;  %v575_v60 = vsel %vm535_vm0, %v3197_v55, 0.0  ;;  %v577_v63 = vsel %vm535_vm0, %v3202_v58, 0.0  ;;  %v3212_v4 = vld [vmem:[%s3080_s22 + $0xb8] sm:$0xff]  ;;  %v579_v6 = vsel %vm535_vm0, %v3207_v61, 0.0  ;;  %v3217_v8 = vld [vmem:[%s3080_s22 + $0xc0] sm:$0xff]  ;;  %v3222_v12 = vld [vmem:[%s3080_s22 + $0xc8] sm:$0xff] }
  0xe7   : > { %v581_v11 = vsel %vm535_vm0, %v3212_v4, 0.0  ;;  %vm1321_vm14 = vcmask 519168   ;;  %s3592_s18 = scalar_lea.vmem [#allocation16], %s3953_s16  ;;  %s3954_s29 = smov 64  }
  0xe8   : > { %v546_v20 = vadd.f32 %v545_v15, %v544_v17  ;;  %v583_v15 = vsel %vm535_vm0, %v3217_v8, 0.0  ;;  %v3227_v17 = vld [vmem:[%s3080_s22 + $0xd0] sm:$0xff]  ;;  %s3952_s20 = sshll.u32 %s2735_s12, 11  ;;  %s1725_s21 = sshll.u32 %s3592_s18, 4  ;;  %s3722_s21 = int_to_ptr.vmem [resolvable:$true] %s1725_s21 }
  0xe9   : > { %s3715_s9 = scalar_lea.hbm %s3942_s7, %s3952_s20  ;;  %s1993_s27 = sshll.u32 %s3076_s24, 6 }
  0xea   : > { %v548_v24 = vadd.f32 %v547_v19, %v546_v20  ;;  %v585_v20 = vsel %vm535_vm0, %v3222_v12, 0.0  ;;  %s1700_s19 = scalar_lea.sflag [#allocation6], %s3076_s24  ;;  %s2589_s3 = scalar_lea.vmem %s3722_s21, 2048 }
  0xeb   : > { %p2590_p11 = scmp.ne.s32.totalorder %s3722_s21, %s2589_s3  ;;  %p3986_p2 = scmp.ne.s32.totalorder %s3967_s8, 0 }
  0xec   : > { %v550_v26 = vadd.f32 %v549_v22, %v548_v24  ;;  %v3232_v22 = vld [vmem:[%s3080_s22 + $0xd8] sm:$0xff]  ;;  %s2758_s17 = smov [#allocation16]  }
  0xed   : > { %p2591_p8 = pnand %p2590_p11, %p3986_p2 }
  0xee   : > { %v552_v29 = vadd.f32 %v551_v25, %v550_v26  ;;  %v587_v25 = vsel %vm535_vm0, %v3227_v17, 0.0  ;;  %v3237_v26 = vld [vmem:[%s3080_s22 + $0xe0] sm:$0xff] }
  0xef   : > { %p2592_p9 = pneg %p2591_p8 }
  0xf0   : > { %v554_v32 = vadd.f32 %v553_v27, %v552_v29  ;;  %v508_v27 = vlaneseq }
  0xf2   : > { %v556_v35 = vadd.f32 %v555_v30, %v554_v32  ;;  %v589_v30 = vsel %vm535_vm0, %v3232_v22, 0.0  ;;  %v3242_v32 = vld [vmem:[%s3080_s22 + $0xe8] sm:$0xff] }
  0xf4   : > { %v558_v38 = vadd.f32 %v557_v33, %v556_v35  ;;  %v591_v35 = vsel %vm535_vm0, %v3237_v26, 0.0 }
  0xf6   : > { %v560_v41 = vadd.f32 %v559_v36, %v558_v38  ;;  %v3247_v36 = vld [vmem:[%s3080_s22 + $0xf0] sm:$0xff]  ;;  %v511_v38 = vshrl.u32 %v508_v27, 7 }
  0xf8   : > { %v562_v44 = vadd.f32 %v561_v39, %v560_v41  ;;  %v593_v41 = vsel %vm535_vm0, %v3242_v32, 0.0 }
  0xfa   : > { %v564_v47 = vadd.f32 %v563_v42, %v562_v44  ;;  %v3252_v42 = vld [vmem:[%s3080_s22 + $0xf8] sm:$0xff]  ;;  %s2593_s22 = sshll.u32 %s2758_s17, 4  ;;  %s2594_s22 = int_to_ptr.vmem [resolvable:$false] %s2593_s22 }
  0xfb   : > { %s2595_s25 = scalar_lea.vmem %s2594_s22, 4096  ;;  %p2596_p4 = scmp.lt.s32.totalorder %s3722_s21, %s2594_s22 }
  0xfc   : > { %v566_v50 = vadd.f32 %v565_v45, %v564_v47  ;;  %v513_v45 = vadd.s32 16, %v511_v38  ;;  %v595_v47 = vsel %vm535_vm0, %v3247_v36, 0.0  ;;  %p2597_p6 = scmp.lt.s32.totalorder %s2595_s25, %s2589_s3 }
  0xfe   : > { %v568_v53 = vadd.f32 %v567_v48, %v566_v50  ;;  %v512_v48 = vadd.s32 8, %v511_v38  ;;  %p2598_p3 = por %p2597_p6, %p2596_p4 }
 0x100   : > { %v570_v56 = vadd.f32 %v569_v51, %v568_v53  ;;  %v514_v51 = vadd.s32 24, %v511_v38  ;;  %v515_v53 = vmul.u32 2, %v511_v38  ;;  %p2599_p7 = pnand %p2598_p3, %p2592_p9 }
 0x102   : > { %v572_v59 = vadd.f32 %v571_v54, %v570_v56  ;;  %v597_v54 = vsel %vm535_vm0, %v3252_v42, 0.0 }
 0x104   : > { %v574_v62 = vadd.f32 %v573_v57, %v572_v59  ;;  %v517_v57 = vmul.u32 2, %v513_v45  ;;  %v516_v59 = vmul.u32 2, %v512_v48 }
 0x106   : > { %v576_v5 = vadd.f32 %v575_v60, %v574_v62  ;;  %v518_v62 = vmul.u32 2, %v514_v51 }
 0x108   : > { %v578_v9 = vadd.f32 %v577_v63, %v576_v5  ;;  %v509_v63 = vand.u32 127, %v508_v27  ;;  %v523_v5 = vadd.s32 2, %v515_v53 }
 0x10a   : > { %v580_v14 = vadd.f32 %v579_v6, %v578_v9  ;;  %v525_v9 = vadd.s32 2, %v517_v57  ;;  %vm519_vm1 = vcmp.ge.s32.totalorder %v509_v63, %v515_v53  ;;  %vm527_vm2 = vcmp.lt.s32.totalorder %v509_v63, %v523_v5 }
 0x10b   : > { %vm521_vm3 = vcmp.ge.s32.totalorder %v509_v63, %v517_v57  ;;  %vm520_vm5 = vcmp.ge.s32.totalorder %v509_v63, %v516_v59  ;;  %vm3258_vm7 = vmand %vm519_vm1, %vm527_vm2  ;;  %vm522_vm8 = vcmp.ge.s32.totalorder %v509_v63, %v518_v62 }
 0x10c   : > { %v582_v19 = vadd.f32 %v581_v11, %v580_v14  ;;  %v524_v11 = vadd.s32 2, %v516_v59  ;;  %vm529_vm4 = vcmp.lt.s32.totalorder %v509_v63, %v525_v9 }
 0x10d   : > { %vm3262_vm10 = vmand %vm521_vm3, %vm529_vm4 }
 0x10e   : > { %v584_v24 = vadd.f32 %v583_v15, %v582_v19  ;;  %v526_v15 = vadd.s32 2, %v518_v62  ;;  %vm528_vm6 = vcmp.lt.s32.totalorder %v509_v63, %v524_v11 }
 0x10f   : > { %vm3266_vm11 = vmand %vm520_vm5, %vm528_vm6 }
 0x110   : > { %v586_v29 = vadd.f32 %v585_v20, %v584_v24  ;;  %vm530_vm9 = vcmp.lt.s32.totalorder %v509_v63, %v526_v15 }
 0x111   : > { %vm3270_vm12 = vmand %vm522_vm8, %vm530_vm9 }
 0x112   : > { %v588_v33 = vadd.f32 %v587_v25, %v586_v29  ;;  %v1493_v25 = vld [vmem:[#allocation15 + $0x18] sm:$0xff] }
 0x114   : > { %v590_v39 = vadd.f32 %v589_v30, %v588_v33 }
 0x116   : > { %v592_v44 = vadd.f32 %v591_v35, %v590_v39 }
 0x118   : > { %v594_v50 = vadd.f32 %v593_v41, %v592_v44 }
 0x11a   : > { %v596_v56 = vadd.f32 %v595_v47, %v594_v50 }
 0x11c   : > { %v598_v60 = vadd.f32 %v597_v54, %v596_v56 }
 0x11e   : > { %v599_v6 = vrot.slane %v598_v60, 4 }
 0x120   : > { %v600_v14 = vadd.f32 %v599_v6, %v598_v60 }
 0x122   : > { %v601_v19 = vrot.slane %v600_v14, 2 }
 0x124   : > { %v602_v24 = vadd.f32 %v601_v19, %v600_v14 }
 0x126   : > { %v603_v27 = vrot.slane %v602_v24, 1 }
 0x128   : > { %v604_v33 = vadd.f32 %v603_v27, %v602_v24 }
 0x12a   : > { %v605_v35 = vsel %vm3258_vm7, %v604_v33, 0.0  ;;  %v607_v38 = vsel %vm3262_vm10, %v604_v33, 0.0  ;;  %v606_v39 = vsel %vm3266_vm11, %v604_v33, 0.0  ;;  %v608_v41 = vsel %vm3270_vm12, %v604_v33, 0.0 }
 0x12b   : > { %v609_v44 = vsel %vm535_vm0, %v605_v35, 0.0  ;;  %v615_v45 = vsel %vm535_vm0, %v607_v38, 0.0  ;;  %v612_v47 = vsel %vm535_vm0, %v606_v39, 0.0  ;;  %v618_v48 = vsel %vm535_vm0, %v608_v41, 0.0 }
 0x12c   : > { %610 = vadd.xlane.f32.xlu0 %v609_v44  ;;  %616 = vadd.xlane.f32.xlu1 %v615_v45 }
 0x130   : > { %613 = vadd.xlane.f32.xlu0 %v612_v47  ;;  %619 = vadd.xlane.f32.xlu1 %v618_v48 }
 0x1b9   : > { %v611_v50 = vpop.xlane.xlu0 %610  ;;  %v617_v51 = vpop.xlane.xlu1 %616 }
 0x1ba   : > { %v621_v53 = vsel %vm3258_vm7, %v611_v50, 0.0  ;;  %v623_v57 = vsel %vm3262_vm10, %v617_v51, 0.0 }
 0x1bb   : > { %v625_v62 = vsel %vm535_vm0, %v621_v53, 0.0  ;;  %v628_v6 = vsel %vm535_vm0, %v623_v57, 0.0 }
 0x1bd   : > { %v614_v54 = vpop.xlane.xlu0 %613  ;;  %v620_v56 = vpop.xlane.xlu1 %619 }
 0x1be   : > { %v622_v59 = vsel %vm3266_vm11, %v614_v54, 0.0  ;;  %v624_v60 = vsel %vm3270_vm12, %v620_v56, 0.0 }
 0x1bf   : > { %v626_v63 = vsel %vm535_vm0, %v622_v59, 0.0  ;;  %v630_v9 = vsel %vm535_vm0, %v624_v60, 0.0 }
 0x1c0   : > { %v627_v5 = vadd.f32 %v626_v63, %v625_v62 }
 0x1c2   : > { %v629_v11 = vadd.f32 %v628_v6, %v627_v5 }
 0x1c4   : > { %v631_v14 = vadd.f32 %v630_v9, %v629_v11 }
 0x1c6   : > { %v632_v15 = vrot.slane %v631_v14, 4 }
 0x1c8   : > { %v633_v19 = vadd.f32 %v632_v15, %v631_v14 }
 0x1ca   : > { %v634_v24 = vrot.slane %v633_v19, 2 }
 0x1cc   : > { %v635_v27 = vadd.f32 %v634_v24, %v633_v19 }
 0x1ce   : > { %v636_v33 = vrot.slane %v635_v27, 1 }
 0x1d0   : > { %v637_v35 = vadd.f32 %v636_v33, %v635_v27 }
 0x1d2   : > { %v3298_v38 = vmul.f32 0.001953125, %v637_v35 }
 0x1d4   : > { %v639_v39 = vsub.f32 %v3099_v0, %v3298_v38  ;;  %v640_v41 = vsub.f32 %v3102_v1, %v3298_v38  ;;  %v641_v44 = vsub.f32 %v3105_v2, %v3298_v38  ;;  %v642_v45 = vsub.f32 %v3108_v3, %v3298_v38 }
 0x1d5   : > { %v643_v50 = vsub.f32 %v3117_v7, %v3298_v38  ;;  %v644_v53 = vsub.f32 %v3122_v10, %v3298_v38  ;;  %v645_v60 = vsub.f32 %v3127_v13, %v3298_v38  ;;  %v646_v6 = vsub.f32 %v3132_v16, %v3298_v38 }
 0x1d6   : > { %v671_v47 = vmul.f32 %v639_v39, %v639_v39  ;;  %v672_v48 = vmul.f32 %v640_v41, %v640_v41  ;;  %v673_v51 = vmul.f32 %v641_v44, %v641_v44  ;;  %v674_v54 = vmul.f32 %v642_v45, %v642_v45 }
 0x1d7   : > { %v675_v62 = vmul.f32 %v643_v50, %v643_v50  ;;  %v676_v9 = vmul.f32 %v644_v53, %v644_v53  ;;  %v647_v15 = vsub.f32 %v3135_v18, %v3298_v38  ;;  %v677_v19 = vmul.f32 %v645_v60, %v645_v60 }
 0x1d8   : > { %v703_v56 = vsel %vm535_vm0, %v671_v47, 0.0  ;;  %v704_v57 = vsel %vm535_vm0, %v672_v48, 0.0  ;;  %v706_v63 = vsel %vm535_vm0, %v673_v51, 0.0  ;;  %v708_v11 = vsel %vm535_vm0, %v674_v54, 0.0 }
 0x1d9   : > { %v705_v59 = vadd.f32 %v704_v57, %v703_v56  ;;  %v710_v24 = vsel %vm535_vm0, %v675_v62, 0.0  ;;  %v648_v33 = vsub.f32 %v3140_v21, %v3298_v38  ;;  %v678_v35 = vmul.f32 %v646_v6, %v646_v6 }
 0x1da   : > { %v712_v39 = vsel %vm535_vm0, %v676_v9, 0.0  ;;  %v649_v44 = vsub.f32 %v3145_v23, %v3298_v38  ;;  %v679_v45 = vmul.f32 %v647_v15, %v647_v15  ;;  %v714_v47 = vsel %vm535_vm0, %v677_v19, 0.0 }
 0x1db   : > { %v707_v5 = vadd.f32 %v706_v63, %v705_v59  ;;  %v650_v50 = vsub.f32 %v3152_v28, %v3298_v38  ;;  %v680_v51 = vmul.f32 %v648_v33, %v648_v33  ;;  %v716_v53 = vsel %vm535_vm0, %v678_v35, 0.0 }
 0x1dc   : > { %v651_v56 = vsub.f32 %v3157_v31, %v3298_v38  ;;  %v681_v57 = vmul.f32 %v649_v44, %v649_v44  ;;  %v718_v59 = vsel %vm535_vm0, %v679_v45, 0.0  ;;  %v652_v62 = vsub.f32 %v3162_v34, %v3298_v38 }
 0x1dd   : > { %v709_v14 = vadd.f32 %v708_v11, %v707_v5  ;;  %v682_v63 = vmul.f32 %v650_v50, %v650_v50  ;;  %v720_v5 = vsel %vm535_vm0, %v680_v51, 0.0  ;;  %v653_v9 = vsub.f32 %v3167_v37, %v3298_v38 }
 0x1de   : > { %v683_v11 = vmul.f32 %v651_v56, %v651_v56  ;;  %v654_v19 = vsub.f32 %v3172_v40, %v3298_v38  ;;  %v655_v35 = vsub.f32 %v3177_v43, %v3298_v38  ;;  %v656_v45 = vsub.f32 %v3182_v46, %v3298_v38 }
 0x1df   : > { %v711_v27 = vadd.f32 %v710_v24, %v709_v14  ;;  %v722_v14 = vsel %vm535_vm0, %v681_v57, 0.0  ;;  %v684_v24 = vmul.f32 %v652_v62, %v652_v62  ;;  %v657_v51 = vsub.f32 %v3187_v49, %v3298_v38 }
 0x1e0   : > { %v658_v57 = vsub.f32 %v3192_v52, %v3298_v38 }
 0x1e1   : > { %v713_v41 = vadd.f32 %v712_v39, %v711_v27  ;;  %v724_v27 = vsel %vm535_vm0, %v682_v63, 0.0  ;;  %v685_v39 = vmul.f32 %v653_v9, %v653_v9  ;;  %v659_v63 = vsub.f32 %v3197_v55, %v3298_v38 }
 0x1e3   : > { %v715_v48 = vadd.f32 %v714_v47, %v713_v41  ;;  %v726_v41 = vsel %vm535_vm0, %v683_v11, 0.0  ;;  %v686_v47 = vmul.f32 %v654_v19, %v654_v19  ;;  %v660_v11 = vsub.f32 %v3202_v58, %v3298_v38 }
 0x1e5   : > { %v717_v54 = vadd.f32 %v716_v53, %v715_v48  ;;  %v728_v48 = vsel %vm535_vm0, %v684_v24, 0.0  ;;  %v687_v53 = vmul.f32 %v655_v35, %v655_v35  ;;  %v661_v24 = vsub.f32 %v3207_v61, %v3298_v38 }
 0x1e7   : > { %v719_v60 = vadd.f32 %v718_v59, %v717_v54  ;;  %v730_v54 = vsel %vm535_vm0, %v685_v39, 0.0  ;;  %v688_v59 = vmul.f32 %v656_v45, %v656_v45  ;;  %v662_v39 = vsub.f32 %v3212_v4, %v3298_v38 }
 0x1e9   : > { %v721_v6 = vadd.f32 %v720_v5, %v719_v60  ;;  %v732_v60 = vsel %vm535_vm0, %v686_v47, 0.0  ;;  %v689_v5 = vmul.f32 %v657_v51, %v657_v51  ;;  %v663_v47 = vsub.f32 %v3217_v8, %v3298_v38 }
 0x1eb   : > { %v723_v15 = vadd.f32 %v722_v14, %v721_v6  ;;  %v734_v6 = vsel %vm535_vm0, %v687_v53, 0.0  ;;  %v690_v14 = vmul.f32 %v658_v57, %v658_v57  ;;  %v664_v53 = vsub.f32 %v3222_v12, %v3298_v38 }
 0x1ed   : > { %v725_v33 = vadd.f32 %v724_v27, %v723_v15  ;;  %v736_v15 = vsel %vm535_vm0, %v688_v59, 0.0  ;;  %v691_v27 = vmul.f32 %v659_v63, %v659_v63  ;;  %v665_v59 = vsub.f32 %v3227_v17, %v3298_v38 }
 0x1ef   : > { %v727_v44 = vadd.f32 %v726_v41, %v725_v33  ;;  %v738_v33 = vsel %vm535_vm0, %v689_v5, 0.0  ;;  %v692_v41 = vmul.f32 %v660_v11, %v660_v11  ;;  %v666_v5 = vsub.f32 %v3232_v22, %v3298_v38 }
 0x1f1   : > { %v729_v50 = vadd.f32 %v728_v48, %v727_v44  ;;  %v740_v44 = vsel %vm535_vm0, %v690_v14, 0.0  ;;  %v693_v48 = vmul.f32 %v661_v24, %v661_v24  ;;  %v667_v14 = vsub.f32 %v3237_v26, %v3298_v38 }
 0x1f3   : > { %v731_v56 = vadd.f32 %v730_v54, %v729_v50  ;;  %v742_v50 = vsel %vm535_vm0, %v691_v27, 0.0  ;;  %v694_v54 = vmul.f32 %v662_v39, %v662_v39  ;;  %v668_v27 = vsub.f32 %v3242_v32, %v3298_v38 }
 0x1f5   : > { %v733_v62 = vadd.f32 %v732_v60, %v731_v56  ;;  %v744_v56 = vsel %vm535_vm0, %v692_v41, 0.0  ;;  %v695_v60 = vmul.f32 %v663_v47, %v663_v47  ;;  %v669_v41 = vsub.f32 %v3247_v36, %v3298_v38 }
 0x1f7   : > { %v735_v9 = vadd.f32 %v734_v6, %v733_v62  ;;  %v746_v62 = vsel %vm535_vm0, %v693_v48, 0.0  ;;  %v696_v6 = vmul.f32 %v664_v53, %v664_v53  ;;  %v670_v48 = vsub.f32 %v3252_v42, %v3298_v38 }
 0x1f9   : > { %v737_v19 = vadd.f32 %v736_v15, %v735_v9  ;;  %v748_v9 = vsel %vm535_vm0, %v694_v54, 0.0  ;;  %v697_v15 = vmul.f32 %v665_v59, %v665_v59  ;;  %v701_v54 = vmul.f32 %v669_v41, %v669_v41 }
 0x1fa   : > { %v702_v59 = vmul.f32 %v670_v48, %v670_v48 }
 0x1fb   : > { %v739_v35 = vadd.f32 %v738_v33, %v737_v19  ;;  %v750_v19 = vsel %vm535_vm0, %v695_v60, 0.0  ;;  %v698_v33 = vmul.f32 %v666_v5, %v666_v5 }
 0x1fd   : > { %v741_v45 = vadd.f32 %v740_v44, %v739_v35  ;;  %v752_v35 = vsel %vm535_vm0, %v696_v6, 0.0  ;;  %v699_v44 = vmul.f32 %v667_v14, %v667_v14  ;;  %v764_v6 = vsel %vm535_vm0, %v702_v59, 0.0 }
 0x1ff   : > { %v743_v51 = vadd.f32 %v742_v50, %v741_v45  ;;  %v754_v45 = vsel %vm535_vm0, %v697_v15, 0.0  ;;  %v700_v50 = vmul.f32 %v668_v27, %v668_v27 }
 0x201   : > { %v745_v57 = vadd.f32 %v744_v56, %v743_v51  ;;  %v756_v51 = vsel %vm535_vm0, %v698_v33, 0.0  ;;  %v758_v56 = vsel %vm535_vm0, %v699_v44, 0.0  ;;  %v760_v60 = vsel %vm535_vm0, %v700_v50, 0.0  ;;  %v2381_v50 = vld [vmem:[#allocation10] sm:$0xff]  }
 0x202   : > { %2165 = vmatprep.subr.bf16.mxu0 %v2381_v50 }
 0x203   : > { %v747_v63 = vadd.f32 %v746_v62, %v745_v57  ;;  %2166 = vmatpush3.bf16.msra.mxu0 %v2381_v50 }
 0x205   : > { %v749_v11 = vadd.f32 %v748_v9, %v747_v63  ;;  %v762_v63 = vsel %vm535_vm0, %v701_v54, 0.0  ;;  %v2384_v54 = vld [vmem:[#allocation10 + $0x18] sm:$0xff]  }
 0x207   : > { %v751_v24 = vadd.f32 %v750_v19, %v749_v11 }
 0x209   : > { %v753_v39 = vadd.f32 %v752_v35, %v751_v24 }
 0x20b   : > { %v755_v47 = vadd.f32 %v754_v45, %v753_v39 }
 0x20d   : > { %v757_v53 = vadd.f32 %v756_v51, %v755_v47  ;;  %v2382_v51 = vld [vmem:[#allocation10 + $0x8] sm:$0xff]  }
 0x20e   : > { %2167 = vmatprep.subr.bf16.mxu0 %v2382_v51 }
 0x20f   : > { %v759_v57 = vadd.f32 %v758_v56, %v757_v53  ;;  %2168 = vmatpush3.bf16.msra.mxu0 %v2382_v51  ;;  %v2383_v53 = vld [vmem:[#allocation10 + $0x10] sm:$0xff]  }
 0x210   : > { %2169 = vmatprep.subr.bf16.mxu0 %v2383_v53  ;;  %v3408_v56 = vld [vmem:[#allocation13 + $0x8] sm:$0xff]  }
 0x211   : > { %v761_v62 = vadd.f32 %v760_v60, %v759_v57  ;;  %2159 = vmatprep.mubr.msk.bf16.mxu1 %vm535_vm0, %v3408_v56  ;;  %v1495_v51 = vld [vmem:[#allocation15 + $0x28] sm:$0xff] }
 0x213   : > { %v763_v5 = vadd.f32 %v762_v63, %v761_v62  ;;  %2170 = vmatpush3.bf16.msra.mxu0 %v2383_v53 }
 0x214   : > { %2171 = vmatprep.subr.bf16.mxu0 %v2384_v54 }
 0x215   : > { %v765_v9 = vadd.f32 %v764_v6, %v763_v5 }
 0x217   : > { %v766_v11 = vrot.slane %v765_v9, 4  ;;  %2172 = vmatpush3.bf16.msra.mxu0 %v2384_v54 }
 0x219   : > { %v767_v14 = vadd.f32 %v766_v11, %v765_v9 }
 0x21b   : > { %v768_v15 = vrot.slane %v767_v14, 2 }
 0x21d   : > { %v769_v19 = vadd.f32 %v768_v15, %v767_v14 }
 0x21f   : > { %v770_v24 = vrot.slane %v769_v19, 1 }
 0x221   : > { %v771_v27 = vadd.f32 %v770_v24, %v769_v19 }
 0x223   : > { %v773_v33 = vsel %vm3266_vm11, %v771_v27, 0.0  ;;  %v772_v35 = vsel %vm3258_vm7, %v771_v27, 0.0  ;;  %v775_v44 = vsel %vm3270_vm12, %v771_v27, 0.0  ;;  %v774_v45 = vsel %vm3262_vm10, %v771_v27, 0.0  ;;  %v1490_v27 = vld [vmem:[#allocation15] sm:$0xff] }
 0x224   : > { %v779_v39 = vsel %vm535_vm0, %v773_v33, 0.0  ;;  %v776_v41 = vsel %vm535_vm0, %v772_v35, 0.0  ;;  %v785_v47 = vsel %vm535_vm0, %v775_v44, 0.0  ;;  %v782_v48 = vsel %vm535_vm0, %v774_v45, 0.0  ;;  %v1494_v44 = vld [vmem:[#allocation15 + $0x20] sm:$0xff] }
 0x225   : > { %780 = vadd.xlane.f32.xlu1 %v779_v39  ;;  %777 = vadd.xlane.f32.xlu0 %v776_v41  ;;  %v2756_v33 = vmov 0   ;;  %v1491_v39 = vld [vmem:[#allocation15 + $0x8] sm:$0xff]  ;;  %v1492_v41 = vld [vmem:[#allocation15 + $0x10] sm:$0xff] }
 0x226   : > { %2379 = vset.pattern.permute.xlu1 %v2756_v33  ;;  %2380 = vset.pattern.permute.xlu0 %v2756_v33 }
 0x229   : > { %786 = vadd.xlane.f32.xlu1 %v785_v47  ;;  %783 = vadd.xlane.f32.xlu0 %v782_v48  ;;  %v1496_v48 = vld [vmem:[#allocation15 + $0x30] sm:$0xff] }
 0x23a   : > { %1500 = vperm.xlu1 %2379, %v1490_v27  }
 0x23e   : > { %1510 = vperm.xlu1 %2379, %v1492_v41  }
 0x23f   : > { %1505 = vperm.xlu0 %2380, %v1491_v39  }
 0x242   : > { %1515 = vperm.xlu1 %2379, %v1493_v25  }
 0x243   : > { %1520 = vperm.xlu0 %2380, %v1494_v44  }
 0x246   : > { %1525 = vperm.xlu1 %2379, %v1495_v51  }
 0x247   : > { %1530 = vperm.xlu0 %2380, %v1496_v48  }
 0x2b2   : > { %v781_v57 = vpop.xlane.xlu1 %780  ;;  %v778_v59 = vpop.xlane.xlu0 %777 }
 0x2b3   : > { %v789_v60 = vsel %vm3266_vm11, %v781_v57, 0.0  ;;  %v788_v62 = vsel %vm3258_vm7, %v778_v59, 0.0  ;;  %v1497_v57 = vld [vmem:[#allocation15 + $0x38] sm:$0xff] }
 0x2b4   : > { %v793_v63 = vsel %vm535_vm0, %v789_v60, 0.0  ;;  %v792_v5 = vsel %vm535_vm0, %v788_v62, 0.0  ;;  %1535 = vperm.xlu1 %2379, %v1497_v57   ;;  %v808_v60 = vld [vmem:[#allocation7] sm:$0x1] }
 0x2b5   : > { %v794_v11 = vadd.f32 %v793_v63, %v792_v5  ;;  %v812_v5 = vld [vmem:[#allocation9] sm:$0x1] }
 0x2b6   : > { %v787_v6 = vpop.xlane.xlu1 %786  ;;  %v784_v9 = vpop.xlane.xlu0 %783 }
 0x2b7   : > { %v791_v14 = vsel %vm3270_vm12, %v787_v6, 0.0  ;;  %v790_v15 = vsel %vm3262_vm10, %v784_v9, 0.0 }
 0x2b8   : > { %v795_v19 = vsel %vm535_vm0, %v790_v15, 0.0  ;;  %v797_v24 = vsel %vm535_vm0, %v791_v14, 0.0 }
 0x2b9   : > { %v796_v29 = vadd.f32 %v795_v19, %v794_v11 }
 0x2bb   : > { %v798_v20 = vadd.f32 %v797_v24, %v796_v29 }
 0x2bd   : > { %v799_v35 = vrot.slane %v798_v20, 4 }
 0x2bf   : > { %v800_v30 = vadd.f32 %v799_v35, %v798_v20 }
 0x2c1   : > { %v801_v45 = vrot.slane %v800_v30, 2 }
 0x2c3   : > { %v802_v47 = vadd.f32 %v801_v45, %v800_v30 }
 0x2c5   : > { %v803_v50 = vrot.slane %v802_v47, 1 }
 0x2c7   : > { %v804_v53 = vadd.f32 %v803_v50, %v802_v47 }
 0x2c9   : > { %v805_v54 = vmul.f32 0.001953125, %v804_v53 }
 0x2cb   : > { %v806_v59 = vadd.f32 1e-06, %v805_v54 }
 0x2cd   : > { %2389 = vrsqrt.f32 %v806_v59 }
 0x2d7   : > { %v2390_v62 = vpop.eup %2389 }
 0x2d8   : > { %v809_v63 = vmul.f32 %v2390_v62, %v808_v60 }
 0x2da   : > { %811 = vst.msk [vmem:[#allocation2] sm:$0x1] %vm810_vm13, %v809_v63  ;;  %v813_v6 = vmul.f32 %v809_v63, %v3298_v38 }
 0x2dc   : > { %v814_v9 = vsub.f32 %v812_v5, %v813_v6 }
 0x2de   : > { %815 = vst.msk [vmem:[#allocation3] sm:$0x1] %vm810_vm13, %v814_v9 }
 0x2e1   : > { %v3425_v11 = vld [vmem:[#allocation2] ss:$0 sm:$0xff] }
 0x2e2   : > { %v857_v14 = vmul.f32 %v3425_v11, %v3099_v0  ;;  %v858_v15 = vmul.f32 %v3425_v11, %v3102_v1  ;;  %v873_v19 = vmul.f32 %v3425_v11, %v3177_v43  ;;  %v874_v29 = vmul.f32 %v3425_v11, %v3182_v46 }
 0x2e3   : > { %v859_v24 = vmul.f32 %v3425_v11, %v3105_v2  ;;  %v860_v38 = vmul.f32 %v3425_v11, %v3108_v3  ;;  %v861_v0 = vmul.f32 %v3425_v11, %v3117_v7  ;;  %v862_v1 = vmul.f32 %v3425_v11, %v3122_v10 }
 0x2e4   : > { %v875_v43 = vmul.f32 %v3425_v11, %v3187_v49  ;;  %v876_v46 = vmul.f32 %v3425_v11, %v3192_v52  ;;  %v863_v25 = vmul.f32 %v3425_v11, %v3127_v13  ;;  %v864_v50 = vmul.f32 %v3425_v11, %v3132_v16 }
 0x2e5   : > { %v3439_v20 = vld [vmem:[#allocation3] ss:$0 sm:$0xff]  ;;  %v865_v51 = vmul.f32 %v3425_v11, %v3135_v18  ;;  %v866_v53 = vmul.f32 %v3425_v11, %v3140_v21  ;;  %v877_v13 = vmul.f32 %v3425_v11, %v3197_v55  ;;  %v878_v57 = vmul.f32 %v3425_v11, %v3202_v58 }
 0x2e6   : > { %v896_v27 = vadd.f32 %v3439_v20, %v857_v14  ;;  %v897_v2 = vadd.f32 %v3439_v20, %v858_v15  ;;  %v912_v3 = vadd.f32 %v3439_v20, %v873_v19  ;;  %v913_v33 = vadd.f32 %v3439_v20, %v874_v29 }
 0x2e7   : > { %v898_v35 = vadd.f32 %v3439_v20, %v859_v24  ;;  %v899_v7 = vadd.f32 %v3439_v20, %v860_v38  ;;  %v900_v10 = vadd.f32 %v3439_v20, %v861_v0  ;;  %v901_v39 = vadd.f32 %v3439_v20, %v862_v1 }
 0x2e8   : > { %v928_v49 = vpack.c.bf16 %v897_v2, %v896_v27  ;;  %v3457_v41 = vpack.c.bf16 %v913_v33, %v912_v3  ;;  %v914_v52 = vadd.f32 %v3439_v20, %v875_v43  ;;  %v915_v30 = vadd.f32 %v3439_v20, %v876_v46 }
 0x2e9   : > { %v929_v44 = vpack.c.bf16 %v899_v7, %v898_v35  ;;  %v930_v47 = vpack.c.bf16 %v901_v39, %v900_v10  ;;  %v902_v54 = vadd.f32 %v3439_v20, %v863_v25  ;;  %v903_v16 = vadd.f32 %v3439_v20, %v864_v50 }
 0x2ea   : > { %2173 = vmatprep.mubr.msk.bf16.mxu0 %vm535_vm0, %v928_v49  ;;  %2221 = vmatprep.subr.msk.bf16.mxu0 %vm535_vm0, %v3457_v41  ;;  %v985_v45 = vsel %vm535_vm0, %v928_v49, 0  ;;  %v3470_v48 = vpack.c.bf16 %v915_v30, %v914_v52  ;;  %v904_v18 = vadd.f32 %v3439_v20, %v865_v51  ;;  %v905_v21 = vadd.f32 %v3439_v20, %v866_v53  ;;  %v3583_v51 = vld [vmem:[#allocation12] ss:$0 sm:$0xff] }
 0x2eb   : > { %2222 = vmatprep.subr.msk.bf16.mxu1 %vm535_vm0, %v3457_v41  ;;  %2174 = vmatmul.mubr.msk.bf16.vlgmr.msra.gmra.mrb[0].mxu0 %vm535_vm0, %v929_v44  ;;  %v916_v55 = vadd.f32 %v3439_v20, %v877_v13  ;;  %v917_v59 = vadd.f32 %v3439_v20, %v878_v57  ;;  %v931_v60 = vpack.c.bf16 %v903_v16, %v902_v54  ;;  %v988_v63 = vsel %vm535_vm0, %v929_v44, 0 }
 0x2ec   : > { %2142 = vmatpush3.bf16.xpose.msra.mxu0 %v985_v45  ;;  %2213 = vmatpush3.bf16.xpose.msra.mxu1 %v985_v45  ;;  %v867_v62 = vmul.f32 %v3425_v11, %v3145_v23  ;;  %v932_v58 = vpack.c.bf16 %v905_v21, %v904_v18  ;;  %v868_v6 = vmul.f32 %v3425_v11, %v3152_v28  ;;  %v991_v0 = vsel %vm535_vm0, %v930_v47, 0 }
 0x2ed   : > { %2177 = vmatprep.mubr.msk.bf16.mxu0 %vm535_vm0, %v930_v47  ;;  %2223 = vmatprep.subr.msk.bf16.mxu0 %vm535_vm0, %v3470_v48  ;;  %v938_v5 = vpack.c.bf16 %v917_v59, %v916_v55  ;;  %v869_v14 = vmul.f32 %v3425_v11, %v3157_v31  ;;  %v870_v15 = vmul.f32 %v3425_v11, %v3162_v34 }
 0x2ee   : > { %2224 = vmatprep.subr.msk.bf16.mxu1 %vm535_vm0, %v3470_v48  ;;  %v906_v9 = vadd.f32 %v3439_v20, %v867_v62  ;;  %v907_v23 = vadd.f32 %v3439_v20, %v868_v6  ;;  %v879_v19 = vmul.f32 %v3425_v11, %v3207_v61  ;;  %v880_v28 = vmul.f32 %v3425_v11, %v3212_v4 }
 0x2ef   : > { %v908_v29 = vadd.f32 %v3439_v20, %v869_v14  ;;  %v909_v31 = vadd.f32 %v3439_v20, %v870_v15  ;;  %v871_v4 = vmul.f32 %v3425_v11, %v3167_v37  ;;  %v872_v43 = vmul.f32 %v3425_v11, %v3172_v40 }
 0x2f0   : > { %v918_v34 = vadd.f32 %v3439_v20, %v879_v19  ;;  %v919_v24 = vadd.f32 %v3439_v20, %v880_v28  ;;  %v933_v38 = vpack.c.bf16 %v907_v23, %v906_v9  ;;  %v881_v46 = vmul.f32 %v3425_v11, %v3217_v8 }
 0x2f1   : > { %v934_v1 = vpack.c.bf16 %v909_v31, %v908_v29  ;;  %v910_v27 = vadd.f32 %v3439_v20, %v871_v4  ;;  %v911_v2 = vadd.f32 %v3439_v20, %v872_v43  ;;  %v882_v3 = vmul.f32 %v3425_v11, %v3222_v12 }
 0x2f2   : > { %v939_v61 = vpack.c.bf16 %v919_v24, %v918_v34  ;;  %v920_v37 = vadd.f32 %v3439_v20, %v881_v46  ;;  %v994_v8 = vsel %vm535_vm0, %v931_v60, 0  ;;  %v883_v12 = vmul.f32 %v3425_v11, %v3227_v17 }
 0x2f3   : > { %2178 = vmatmul.mubr.msk.bf16.gmra.mrb[4].mxu0 %vm535_vm0, %v931_v60  ;;  %v921_v40 = vadd.f32 %v3439_v20, %v882_v3  ;;  %v935_v33 = vpack.c.bf16 %v911_v2, %v910_v27  ;;  %v884_v7 = vmul.f32 %v3425_v11, %v3232_v22  ;;  %v997_v49 = vsel %vm535_vm0, %v932_v58, 0 }
 0x2f4   : > { %2144 = vmatpush3.bf16.xpose.msra.mxu0 %v988_v63  ;;  %2214 = vmatpush3.bf16.xpose.msra.mxu1 %v988_v63  ;;  %v922_v10 = vadd.f32 %v3439_v20, %v883_v12  ;;  %v885_v17 = vmul.f32 %v3425_v11, %v3237_v26  ;;  %v886_v22 = vmul.f32 %v3425_v11, %v3242_v32  ;;  %v1000_v44 = vsel %vm535_vm0, %v933_v38, 0 }
 0x2f5   : > { %2181 = vmatprep.mubr.msk.bf16.mxu0 %vm535_vm0, %v932_v58  ;;  %2225 = vmatprep.subr.msk.bf16.mxu0 %vm535_vm0, %v938_v5  ;;  %v940_v35 = vpack.c.bf16 %v921_v40, %v920_v37  ;;  %v923_v39 = vadd.f32 %v3439_v20, %v884_v7  ;;  %v887_v26 = vmul.f32 %v3425_v11, %v3247_v36  ;;  %v2388_v36 = vld [vmem:[#allocation13] sm:$0xff]  }
 0x2f6   : > { %2226 = vmatprep.subr.msk.bf16.mxu1 %vm535_vm0, %v938_v5  ;;  %v924_v52 = vadd.f32 %v3439_v20, %v885_v17  ;;  %v925_v30 = vadd.f32 %v3439_v20, %v886_v22  ;;  %v888_v32 = vmul.f32 %v3425_v11, %v3252_v42  ;;  %v1006_v42 = vsel %vm535_vm0, %v935_v33, 0  ;;  %v2386_v11 = vld [vmem:[#allocation13 + $0x10] sm:$0xff]  }
 0x2f7   : > { %v926_v25 = vadd.f32 %v3439_v20, %v887_v26 }
 0x2f8   : > { %v942_v45 = vpack.c.bf16 %v925_v30, %v924_v52  ;;  %v927_v47 = vadd.f32 %v3439_v20, %v888_v32  ;;  %v2387_v20 = vld [vmem:[#allocation13 + $0x18] sm:$0xff]  }
 0x2fa   : > { %v943_v50 = vpack.c.bf16 %v927_v47, %v926_v25 }
 0x2fb   : > { %2182 = vmatmul.mubr.msk.bf16.gmra.mrb[8].mxu0 %vm535_vm0, %v933_v38 }
 0x2fc   : > { %2146 = vmatpush3.bf16.xpose.msra.mxu0 %v991_v0  ;;  %2215 = vmatpush3.bf16.xpose.msra.mxu1 %v991_v0 }
 0x2fd   : > { %2185 = vmatprep.mubr.msk.bf16.mxu0 %vm535_vm0, %v934_v1  ;;  %2227 = vmatprep.subr.msk.bf16.mxu0 %vm535_vm0, %v939_v61 }
 0x2fe   : > { %2228 = vmatprep.subr.msk.bf16.mxu1 %vm535_vm0, %v939_v61 }
 0x303   : > { %2186 = vmatmul.mubr.msk.bf16.gmra.mrb[12].mxu0 %vm535_vm0, %v935_v33 }
 0x304   : > { %2148 = vmatpush3.bf16.xpose.msra.mxu0 %v994_v8  ;;  %2216 = vmatpush3.bf16.xpose.msra.mxu1 %v994_v8 }
 0x305   : > { %2189 = vmatprep.mubr.msk.bf16.mxu0 %vm535_vm0, %v3457_v41  ;;  %2229 = vmatprep.subr.msk.bf16.mxu0 %vm535_vm0, %v940_v35  ;;  %v941_v41 = vpack.c.bf16 %v923_v39, %v922_v10 }
 0x306   : > { %2230 = vmatprep.subr.msk.bf16.mxu1 %vm535_vm0, %v940_v35 }
 0x30b   : > { %2190 = vmatmul.mubr.msk.bf16.gmra.mrb[16].mxu0 %vm535_vm0, %v3470_v48  ;;  %v1003_v48 = vsel %vm535_vm0, %v934_v1, 0 }
 0x30c   : > { %2150 = vmatpush3.bf16.xpose.msra.mxu0 %v997_v49  ;;  %2217 = vmatpush3.bf16.xpose.msra.mxu1 %v997_v49 }
 0x30d   : > { %2193 = vmatprep.mubr.msk.bf16.mxu0 %vm535_vm0, %v938_v5  ;;  %2231 = vmatprep.subr.msk.bf16.mxu0 %vm535_vm0, %v941_v41 }
 0x30e   : > { %2232 = vmatprep.subr.msk.bf16.mxu1 %vm535_vm0, %v941_v41 }
 0x313   : > { %2194 = vmatmul.mubr.msk.bf16.gmra.mrb[20].mxu0 %vm535_vm0, %v939_v61 }
 0x314   : > { %2152 = vmatpush3.bf16.xpose.msra.mxu0 %v1000_v44  ;;  %2218 = vmatpush3.bf16.xpose.msra.mxu1 %v1000_v44 }
 0x315   : > { %2197 = vmatprep.mubr.msk.bf16.mxu0 %vm535_vm0, %v940_v35  ;;  %2233 = vmatprep.subr.msk.bf16.mxu0 %vm535_vm0, %v942_v45 }
 0x316   : > { %2234 = vmatprep.subr.msk.bf16.mxu1 %vm535_vm0, %v942_v45 }
 0x31b   : > { %2198 = vmatmul.mubr.msk.bf16.gmra.mrb[24].mxu0 %vm535_vm0, %v941_v41 }
 0x31c   : > { %2154 = vmatpush3.bf16.xpose.msra.mxu0 %v1003_v48  ;;  %2219 = vmatpush3.bf16.xpose.msra.mxu1 %v1003_v48 }
 0x31d   : > { %2201 = vmatprep.mubr.msk.bf16.mxu0 %vm535_vm0, %v942_v45  ;;  %2235 = vmatprep.subr.msk.bf16.mxu0 %vm535_vm0, %v943_v50 }
 0x31e   : > { %2236 = vmatprep.subr.msk.bf16.mxu1 %vm535_vm0, %v943_v50 }
 0x323   : > { %2202 = vmatmul.mubr.msk.bf16.gmra.mrb[28].mxu0 %vm535_vm0, %v943_v50 }
 0x324   : > { %2156 = vmatpush3.bf16.xpose.msra.mxu0 %v1006_v42  ;;  %2220 = vmatpush3.bf16.xpose.msra.mxu1 %v1006_v42 }
 0x325   : > { %2157 = vmatprep.mubr.msk.bf16.mxu0 %vm535_vm0, %v2388_v36 }
 0x32b   : > { %2160 = vmatmul.mubr.msk.bf16.vlgmr.msra.gmra.mrb[0].mxu1 %vm535_vm0, %v3408_v56  ;;  %2158 = vmatmul.mubr.msk.bf16.vlgmr.msra.gmra.mrb[32].mxu0 %vm535_vm0, %v2388_v36 }
 0x32c   : > { %2161 = vmatprep.mubr.msk.bf16.mxu1 %vm535_vm0, %v2386_v11 }
 0x333   : > { %2162 = vmatmul.mubr.msk.bf16.gmra.mrb[4].mxu1 %vm535_vm0, %v2386_v11 }
 0x334   : > { %2163 = vmatprep.mubr.msk.bf16.mxu1 %vm535_vm0, %v2387_v20 }
 0x33b   : > { %2164 = vmatmul.mubr.msk.bf16.gmra.mrb[8].mxu1 %vm535_vm0, %v2387_v20 }
 0x3be   : > { %v2175_v53 = vpop.f32.mrb[0].mxu0 }
 0x3bf   : > { %v1075_v13 = vadd.f32 %v2175_v53, %v3583_v51  ;;  %v1066_v54 = vpop.f32.mrb[1].mxu0 }
 0x3c0   : > { %v1067_v56 = vadd.f32 %v3583_v51, %v1066_v54  ;;  %v2176_v16 = vpop.f32.mrb[2].mxu0 }
 0x3c1   : > { %v2080_v57 = vpack.c.bf16 %v1075_v13, %v1075_v13  ;;  %v1078_v18 = vadd.f32 %v2176_v16, %v3583_v51  ;;  %v1069_v21 = vpop.f32.mrb[3].mxu0 }
 0x3c2   : > { %v2078_v55 = vpack.c.bf16 %v1067_v56, %v1067_v56  ;;  %v1070_v59 = vadd.f32 %v3583_v51, %v1069_v21 }
 0x3c3   : > { %1324 = vst.msk [vmem:[%s3592_s18 + $0x8] sm:$0xf] %vm1321_vm14, %v2080_v57  ;;  %v2081_v60 = vpack.c.bf16 %v1078_v18, %v1078_v18  ;;  %1358 = vrot.lane.b32.xlu1 %v2080_v57, %s3954_s29 }
 0x3c4   : > { %1322 = vst.msk [vmem:[%s3592_s18] sm:$0xf] %vm1321_vm14, %v2078_v55  ;;  %v2079_v62 = vpack.c.bf16 %v1070_v59, %v1070_v59  ;;  %1354 = vrot.lane.b32.xlu0 %v2078_v55, %s3954_s29 }
 0x3c5   : > { %1325 = vst.msk [vmem:[%s3592_s18 + $0xc] sm:$0xf] %vm1321_vm14, %v2081_v60 }
 0x3c6   : > { %1323 = vst.msk [vmem:[%s3592_s18 + $0x4] sm:$0xf] %vm1321_vm14, %v2079_v62  ;;  %v2179_v63 = vpop.f32.mrb[4].mxu0 }
 0x3c7   : > { %v1091_v58 = vadd.f32 %v2179_v63, %v3583_v51  ;;  %1360 = vrot.lane.b32.xlu1 %v2081_v60, %s3954_s29  ;;  %v1082_v5 = vpop.f32.mrb[5].mxu0 }
 0x3c8   : > { %v1083_v6 = vadd.f32 %v3583_v51, %v1082_v5  ;;  %v2180_v9 = vpop.f32.mrb[6].mxu0 }
 0x3c9   : > { %v2084_v14 = vpack.c.bf16 %v1091_v58, %v1091_v58  ;;  %v1094_v15 = vadd.f32 %v2180_v9, %v3583_v51  ;;  %v1085_v23 = vpop.f32.mrb[7].mxu0 }
 0x3ca   : > { %v2082_v19 = vpack.c.bf16 %v1083_v6, %v1083_v6  ;;  %v1086_v28 = vadd.f32 %v3583_v51, %v1085_v23 }
 0x3cb   : > { %1328 = vst.msk [vmem:[%s3592_s18 + $0x18] sm:$0xf] %vm1321_vm14, %v2084_v14  ;;  %v2085_v29 = vpack.c.bf16 %v1094_v15, %v1094_v15  ;;  %1356 = vrot.lane.b32.xlu1 %v2079_v62, %s3954_s29  ;;  %1366 = vrot.lane.b32.xlu0 %v2084_v14, %s3954_s29  ;;  %v3688_v14 = vpop.permute.xlu1 %1500 }
 0x3cc   : > { %1326 = vst.msk [vmem:[%s3592_s18 + $0x10] sm:$0xf] %vm1321_vm14, %v2082_v19  ;;  %v2083_v31 = vpack.c.bf16 %v1086_v28, %v1086_v28 }
 0x3cd   : > { %1329 = vst.msk [vmem:[%s3592_s18 + $0x1c] sm:$0xf] %vm1321_vm14, %v2085_v29 }
 0x3ce   : > { %1327 = vst.msk [vmem:[%s3592_s18 + $0x14] sm:$0xf] %vm1321_vm14, %v2083_v31  ;;  %v2183_v34 = vpop.f32.mrb[8].mxu0 }
 0x3cf   : > { %v1107_v24 = vadd.f32 %v2183_v34, %v3583_v51  ;;  %v1098_v38 = vpop.f32.mrb[9].mxu0  ;;  %1368 = vrot.lane.b32.xlu1 %v2085_v29, %s3954_s29  ;;  %1362 = vrot.lane.b32.xlu0 %v2082_v19, %s3954_s29 }
 0x3d0   : > { %v1099_v0 = vadd.f32 %v3583_v51, %v1098_v38  ;;  %v2184_v1 = vpop.f32.mrb[10].mxu0 }
 0x3d1   : > { %v2088_v61 = vpack.c.bf16 %v1107_v24, %v1107_v24  ;;  %v1110_v4 = vadd.f32 %v2184_v1, %v3583_v51  ;;  %v1101_v43 = vpop.f32.mrb[11].mxu0  ;;  %v1511_v24 = vpop.permute.xlu1 %1510 }
 0x3d2   : > { %v2086_v46 = vpack.c.bf16 %v1099_v0, %v1099_v0  ;;  %v1102_v27 = vadd.f32 %v3583_v51, %v1101_v43 }
 0x3d3   : > { %1332 = vst.msk [vmem:[%s3592_s18 + $0x28] sm:$0xf] %vm1321_vm14, %v2088_v61  ;;  %v2089_v2 = vpack.c.bf16 %v1110_v4, %v1110_v4  ;;  %1364 = vrot.lane.b32.xlu1 %v2083_v31, %s3954_s29  ;;  %1374 = vrot.lane.b32.xlu0 %v2088_v61, %s3954_s29 }
 0x3d4   : > { %1330 = vst.msk [vmem:[%s3592_s18 + $0x20] sm:$0xf] %vm1321_vm14, %v2086_v46  ;;  %v2087_v3 = vpack.c.bf16 %v1102_v27, %v1102_v27 }
 0x3d5   : > { %1333 = vst.msk [vmem:[%s3592_s18 + $0x2c] sm:$0xf] %vm1321_vm14, %v2089_v2 }
 0x3d6   : > { %1331 = vst.msk [vmem:[%s3592_s18 + $0x24] sm:$0xf] %vm1321_vm14, %v2087_v3  ;;  %v2187_v37 = vpop.f32.mrb[12].mxu0 }
 0x3d7   : > { %v1123_v40 = vadd.f32 %v2187_v37, %v3583_v51  ;;  %v1114_v33 = vpop.f32.mrb[13].mxu0  ;;  %1376 = vrot.lane.b32.xlu1 %v2089_v2, %s3954_s29  ;;  %1370 = vrot.lane.b32.xlu0 %v2086_v46, %s3954_s29 }
 0x3d8   : > { %v1115_v8 = vadd.f32 %v3583_v51, %v1114_v33  ;;  %v2188_v35 = vpop.f32.mrb[14].mxu0 }
 0x3d9   : > { %v2092_v12 = vpack.c.bf16 %v1123_v40, %v1123_v40  ;;  %v1126_v7 = vadd.f32 %v2188_v35, %v3583_v51  ;;  %v1117_v10 = vpop.f32.mrb[15].mxu0 }
 0x3da   : > { %v2090_v39 = vpack.c.bf16 %v1115_v8, %v1115_v8  ;;  %v1118_v49 = vadd.f32 %v3583_v51, %v1117_v10 }
 0x3db   : > { %1336 = vst.msk [vmem:[%s3592_s18 + $0x38] sm:$0xf] %vm1321_vm14, %v2092_v12  ;;  %v2093_v41 = vpack.c.bf16 %v1126_v7, %v1126_v7  ;;  %1372 = vrot.lane.b32.xlu1 %v2087_v3, %s3954_s29  ;;  %v1506_v3 = vpop.permute.xlu0 %1505 }
 0x3dc   : > { %1334 = vst.msk [vmem:[%s3592_s18 + $0x30] sm:$0xf] %vm1321_vm14, %v2090_v39  ;;  %v2091_v17 = vpack.c.bf16 %v1118_v49, %v1118_v49  ;;  %1378 = vrot.lane.b32.xlu0 %v2090_v39, %s3954_s29 }
 0x3dd   : > { %1337 = vst.msk [vmem:[%s3592_s18 + $0x3c] sm:$0xf] %vm1321_vm14, %v2093_v41 }
 0x3de   : > { %1335 = vst.msk [vmem:[%s3592_s18 + $0x34] sm:$0xf] %vm1321_vm14, %v2091_v17  ;;  %v2191_v22 = vpop.f32.mrb[16].mxu0 }
 0x3df   : > { %v1139_v52 = vadd.f32 %v2191_v22, %v3583_v51  ;;  %v1130_v30 = vpop.f32.mrb[17].mxu0  ;;  %1382 = vrot.lane.b32.xlu1 %v2092_v12, %s3954_s29 }
 0x3e0   : > { %v1131_v44 = vadd.f32 %v3583_v51, %v1130_v30  ;;  %v2192_v45 = vpop.f32.mrb[18].mxu0  ;;  %1384 = vrot.lane.b32.xlu0 %v2093_v41, %s3954_s29 }
 0x3e1   : > { %v2096_v26 = vpack.c.bf16 %v1139_v52, %v1139_v52  ;;  %v1142_v32 = vadd.f32 %v2192_v45, %v3583_v51  ;;  %v1133_v25 = vpop.f32.mrb[19].mxu0 }
 0x3e2   : > { %v2094_v47 = vpack.c.bf16 %v1131_v44, %v1131_v44  ;;  %v1134_v48 = vadd.f32 %v3583_v51, %v1133_v25 }
 0x3e3   : > { %1340 = vst.msk [vmem:[%s3592_s18 + $0x48] sm:$0xf] %vm1321_vm14, %v2096_v26  ;;  %v2097_v50 = vpack.c.bf16 %v1142_v32, %v1142_v32  ;;  %1390 = vrot.lane.b32.xlu1 %v2096_v26, %s3954_s29 }
 0x3e4   : > { %1338 = vst.msk [vmem:[%s3592_s18 + $0x40] sm:$0xf] %vm1321_vm14, %v2094_v47  ;;  %v2095_v36 = vpack.c.bf16 %v1134_v48, %v1134_v48  ;;  %1380 = vrot.lane.b32.xlu0 %v2091_v17, %s3954_s29 }
 0x3e5   : > { %1341 = vst.msk [vmem:[%s3592_s18 + $0x4c] sm:$0xf] %vm1321_vm14, %v2097_v50 }
 0x3e6   : > { %1339 = vst.msk [vmem:[%s3592_s18 + $0x44] sm:$0xf] %vm1321_vm14, %v2095_v36  ;;  %v2195_v42 = vpop.f32.mrb[20].mxu0 }
 0x3e7   : > { %v1155_v11 = vadd.f32 %v2195_v42, %v3583_v51  ;;  %v1146_v20 = vpop.f32.mrb[21].mxu0  ;;  %1386 = vrot.lane.b32.xlu1 %v2094_v47, %s3954_s29 }
 0x3e8   : > { %v1147_v53 = vadd.f32 %v3583_v51, %v1146_v20  ;;  %v2196_v13 = vpop.f32.mrb[22].mxu0  ;;  %1392 = vrot.lane.b32.xlu0 %v2097_v50, %s3954_s29 }
 0x3e9   : > { %v2100_v54 = vpack.c.bf16 %v1155_v11, %v1155_v11  ;;  %v1158_v56 = vadd.f32 %v2196_v13, %v3583_v51  ;;  %v1149_v16 = vpop.f32.mrb[23].mxu0 }
 0x3ea   : > { %v2098_v57 = vpack.c.bf16 %v1147_v53, %v1147_v53  ;;  %v1150_v18 = vadd.f32 %v3583_v51, %v1149_v16 }
 0x3eb   : > { %1344 = vst.msk [vmem:[%s3592_s18 + $0x58] sm:$0xf] %vm1321_vm14, %v2100_v54  ;;  %v2101_v21 = vpack.c.bf16 %v1158_v56, %v1158_v56  ;;  %1398 = vrot.lane.b32.xlu1 %v2100_v54, %s3954_s29 }
 0x3ec   : > { %1342 = vst.msk [vmem:[%s3592_s18 + $0x50] sm:$0xf] %vm1321_vm14, %v2098_v57  ;;  %v2099_v55 = vpack.c.bf16 %v1150_v18, %v1150_v18  ;;  %1388 = vrot.lane.b32.xlu0 %v2095_v36, %s3954_s29 }
 0x3ed   : > { %1345 = vst.msk [vmem:[%s3592_s18 + $0x5c] sm:$0xf] %vm1321_vm14, %v2101_v21 }
 0x3ee   : > { %1343 = vst.msk [vmem:[%s3592_s18 + $0x54] sm:$0xf] %vm1321_vm14, %v2099_v55  ;;  %v2199_v59 = vpop.f32.mrb[24].mxu0 }
 0x3ef   : > { %v1171_v60 = vadd.f32 %v2199_v59, %v3583_v51  ;;  %v1162_v62 = vpop.f32.mrb[25].mxu0  ;;  %1394 = vrot.lane.b32.xlu1 %v2098_v57, %s3954_s29 }
 0x3f0   : > { %v1163_v63 = vadd.f32 %v3583_v51, %v1162_v62  ;;  %v2200_v58 = vpop.f32.mrb[26].mxu0  ;;  %1400 = vrot.lane.b32.xlu0 %v2101_v21, %s3954_s29 }
 0x3f1   : > { %v2104_v5 = vpack.c.bf16 %v1171_v60, %v1171_v60  ;;  %v1174_v6 = vadd.f32 %v2200_v58, %v3583_v51  ;;  %v1165_v9 = vpop.f32.mrb[27].mxu0 }
 0x3f2   : > { %v2102_v15 = vpack.c.bf16 %v1163_v63, %v1163_v63  ;;  %v1166_v23 = vadd.f32 %v3583_v51, %v1165_v9 }
 0x3f3   : > { %1348 = vst.msk [vmem:[%s3592_s18 + $0x68] sm:$0xf] %vm1321_vm14, %v2104_v5  ;;  %v2105_v19 = vpack.c.bf16 %v1174_v6, %v1174_v6  ;;  %1406 = vrot.lane.b32.xlu1 %v2104_v5, %s3954_s29 }
 0x3f4   : > { %1346 = vst.msk [vmem:[%s3592_s18 + $0x60] sm:$0xf] %vm1321_vm14, %v2102_v15  ;;  %v2103_v28 = vpack.c.bf16 %v1166_v23, %v1166_v23  ;;  %1396 = vrot.lane.b32.xlu0 %v2099_v55, %s3954_s29 }
 0x3f5   : > { %1349 = vst.msk [vmem:[%s3592_s18 + $0x6c] sm:$0xf] %vm1321_vm14, %v2105_v19 }
 0x3f6   : > { %1347 = vst.msk [vmem:[%s3592_s18 + $0x64] sm:$0xf] %vm1321_vm14, %v2103_v28  ;;  %v2203_v29 = vpop.f32.mrb[28].mxu0 }
 0x3f7   : > { %v1187_v31 = vadd.f32 %v2203_v29, %v3583_v51  ;;  %v1178_v34 = vpop.f32.mrb[29].mxu0  ;;  %1402 = vrot.lane.b32.xlu1 %v2102_v15, %s3954_s29 }
 0x3f8   : > { %v1179_v38 = vadd.f32 %v3583_v51, %v1178_v34  ;;  %v2204_v0 = vpop.f32.mrb[30].mxu0  ;;  %1408 = vrot.lane.b32.xlu0 %v2105_v19, %s3954_s29 }
 0x3f9   : > { %v2108_v1 = vpack.c.bf16 %v1187_v31, %v1187_v31  ;;  %v1190_v61 = vadd.f32 %v2204_v0, %v3583_v51  ;;  %v1181_v4 = vpop.f32.mrb[31].mxu0 }
 0x3fa   : > { %v2106_v43 = vpack.c.bf16 %v1179_v38, %v1179_v38  ;;  %v1182_v46 = vadd.f32 %v3583_v51, %v1181_v4  ;;  %v1516_v51 = vpop.permute.xlu1 %1515 }
 0x3fb   : > { %1352 = vst.msk [vmem:[%s3592_s18 + $0x78] sm:$0xf] %vm1321_vm14, %v2108_v1  ;;  %v2109_v27 = vpack.c.bf16 %v1190_v61, %v1190_v61 }
 0x3fc   : > { %1350 = vst.msk [vmem:[%s3592_s18 + $0x70] sm:$0xf] %vm1321_vm14, %v2106_v43  ;;  %v2107_v2 = vpack.c.bf16 %v1182_v46, %v1182_v46  ;;  %1410 = vrot.lane.b32.xlu1 %v2106_v43, %s3954_s29  ;;  %1404 = vrot.lane.b32.xlu0 %v2103_v28, %s3954_s29 }
 0x3fd   : > { %1353 = vst.msk [vmem:[%s3592_s18 + $0x7c] sm:$0xf] %vm1321_vm14, %v2109_v27 }
 0x3fe   : > { %1351 = vst.msk [vmem:[%s3592_s18 + $0x74] sm:$0xf] %vm1321_vm14, %v2107_v2  ;;  %v1614_v37 = vpop.f32.mrb[0].mxu1  ;;  %v1604_v40 = vpop.f32.mrb[32].mxu0 }
 0x3ff   : > { %v1615_v33 = vadd.f32 %v1614_v37, %v1511_v24  ;;  %v1616_v8 = vpop.f32.mrb[1].mxu1  ;;  %v1605_v35 = vadd.f32 %v1604_v40, %v3688_v14  ;;  %v1606_v12 = vpop.f32.mrb[33].mxu0 }
 0x400   : > { %2602 = shalt.err (!%p2599_p7)
}
 0x401   : > { %s2603_s18 = scalar_lea.hbm %s3715_s9, 2048  ;;  %s2607_s17 = scalar_lea.hbm %s3942_s7, 4096 }
 0x402   : > { %p2604_p12 = scmp.ne.s32.totalorder %s3715_s9, %s2603_s18  ;;  %p2608_p1 = scmp.lt.u32.totalorder %s3715_s9, %s3942_s7 }
 0x403   : > { %p2609_p10 = scmp.lt.u32.totalorder %s2607_s17, %s2603_s18  ;;  %p2611_p11 = scmp.lt.u32.totalorder %s2603_s18, %s3715_s9 }
 0x404   : > { %p2605_p0 = pnand %p2604_p12, %p3986_p2 }
 0x405   : > { %p2610_p13 = por %p2609_p10, %p2608_p1 }
 0x406   : > { %p2606_p5 = pneg %p2605_p0 }
 0x407   : > { %p2612_p8 = por %p2611_p11, %p2610_p13 }
 0x409   : > { %p2613_p9 = pnand %p2612_p8, %p2606_p5 }
 0x40b   : > { %2616 = shalt.err (!%p2613_p9)
}
 0x40c   : > { %s2759_s3 = smov 4   ;;  %1414 = vrot.lane.b32.xlu1 %v2108_v1, %s3954_s29  ;;  %1412 = vrot.lane.b32.xlu0 %v2107_v2, %s3954_s29  ;;  %v1617_v7 = vadd.f32 %v1616_v8, %v1511_v24  ;;  %v1618_v10 = vpop.f32.mrb[2].mxu1  ;;  %v1607_v39 = vadd.f32 %v1606_v12, %v3688_v14  ;;  %v1608_v49 = vpop.f32.mrb[34].mxu0  ;;  %s3763_s16 = scalar_lea.vmem [#allocation17], %s1993_s27 }
 0x40d   : > { %2263 = dma.vmem_to_hbm [thread:$0]  (%p3986_p2), %s3722_s21, 2048, %s3715_s9, %s1700_s19, %s3954_s29, %s3954_s29, %s2759_s3   ;;  %v1619_v41 = vadd.f32 %v1618_v10, %v1516_v51  ;;  %v1620_v17 = vpop.f32.mrb[3].mxu1  ;;  %v1609_v22 = vadd.f32 %v1608_v49, %v1506_v3  ;;  %v1610_v52 = vpop.f32.mrb[35].mxu0 }
 0x40e   : > { %v2112_v30 = vpack.c.bf16 %v1617_v7, %v1615_v33  ;;  %v1621_v44 = vadd.f32 %v1620_v17, %v1516_v51  ;;  %v2110_v45 = vpack.c.bf16 %v1607_v39, %v1605_v35  ;;  %v1611_v26 = vadd.f32 %v1610_v52, %v1506_v3  ;;  %v1624_v47 = vpop.f32.mrb[4].mxu1  ;;  %v1521_v48 = vpop.permute.xlu0 %1520  ;;  %s1743_s20 = sshll.u32 %s3763_s16, 4  ;;  %s1704_s9 = sand.u32 1, %s2845_s15   ;;  %s3774_s20 = int_to_ptr.vmem [resolvable:$true] %s1743_s20 }
 0x40f   : > { %v1626_v50 = vpop.f32.mrb[5].mxu1  ;;  %v1625_v36 = vadd.f32 %v1624_v47, %v1521_v48  ;;  %v1526_v11 = vpop.permute.xlu1 %1525  ;;  %s2119_s21 = sshll.u32 %s2735_s12, 10  ;;  %s3987_s25 = sld [smem:[#allocation28_spill]] }
 0x410   : > { %1416 = vrot.lane.b32.xlu0 %v2109_v27, %s3954_s29  ;;  %1693 = vst [vmem:[%s3763_s16 + $0x10] sm:$0xff] %v2112_v30  ;;  %v2113_v32 = vpack.c.bf16 %v1621_v44, %v1619_v41  ;;  %1691 = vst [vmem:[%s3763_s16] sm:$0xff] %v2110_v45  ;;  %v2111_v25 = vpack.c.bf16 %v1611_v26, %v1609_v22  ;;  %v1628_v42 = vpop.f32.mrb[6].mxu1  ;;  %v1627_v20 = vadd.f32 %v1626_v50, %v1521_v48  ;;  %s3783_s28 = scalar_lea.sflag [#allocation18], %s1704_s9  ;;  %s2617_s15 = scalar_lea.vmem %s3774_s20, 1024 }
 0x411   : > { %v1629_v53 = vadd.f32 %v1628_v42, %v1526_v11  ;;  %v1630_v13 = vpop.f32.mrb[7].mxu1  ;;  %p2618_p4 = scmp.ne.s32.totalorder %s3774_s20, %s2617_s15  ;;  %s2760_s17 = smov [#allocation17]  }
 0x412   : > { %1694 = vst [vmem:[%s3763_s16 + $0x18] sm:$0xff] %v2113_v32  ;;  %1692 = vst [vmem:[%s3763_s16 + $0x8] sm:$0xff] %v2111_v25  ;;  %v1631_v54 = vadd.f32 %v1630_v13, %v1526_v11  ;;  %v2114_v56 = vpack.c.bf16 %v1627_v20, %v1625_v36  ;;  %v1531_v57 = vpop.permute.xlu0 %1530  ;;  %v1634_v18 = vpop.f32.mrb[8].mxu1  ;;  %s2621_s22 = sshll.u32 %s2760_s17, 4  ;;  %s2622_s22 = int_to_ptr.vmem [resolvable:$false] %s2621_s22 }
 0x413   : > { %v1536_v21 = vpop.permute.xlu1 %1535  ;;  %v1636_v55 = vpop.f32.mrb[9].mxu1  ;;  %v1635_v59 = vadd.f32 %v1634_v18, %v1531_v57  ;;  %p2619_p6 = pnand %p2618_p4, %p3986_p2  ;;  %s2623_s29 = scalar_lea.vmem %s2622_s22, 2048 }
 0x414   : > { %v2115_v16 = vpack.c.bf16 %v1631_v54, %v1629_v53  ;;  %1695 = vst [vmem:[%s3763_s16 + $0x20] sm:$0xff] %v2114_v56  ;;  %v1638_v60 = vpop.f32.mrb[10].mxu1  ;;  %v1637_v62 = vadd.f32 %v1636_v55, %v1531_v57  ;;  %p2624_p7 = scmp.lt.s32.totalorder %s3774_s20, %s2622_s22  ;;  %p2625_p12 = scmp.lt.s32.totalorder %s2623_s29, %s2617_s15 }
 0x415   : > { %v1639_v63 = vadd.f32 %v1638_v60, %v1536_v21  ;;  %v1640_v58 = vpop.f32.mrb[11].mxu1  ;;  %s3779_s18 = scalar_lea.hbm %s3987_s25, %s2119_s21  ;;  %p2620_p3 = pneg %p2619_p6 }
 0x416   : > { %1696 = vst [vmem:[%s3763_s16 + $0x28] sm:$0xff] %v2115_v16  ;;  %v1641_v5 = vadd.f32 %v1640_v58, %v1536_v21  ;;  %v2116_v6 = vpack.c.bf16 %v1637_v62, %v1635_v59  ;;  %p2626_p0 = por %p2625_p12, %p2624_p7 }
 0x418   : > { %v2117_v9 = vpack.c.bf16 %v1641_v5, %v1639_v63  ;;  %1697 = vst [vmem:[%s3763_s16 + $0x30] sm:$0xff] %v2116_v6  ;;  %p2627_p5 = pnand %p2626_p0, %p2620_p3 }
 0x41a   : > { %1698 = vst [vmem:[%s3763_s16 + $0x38] sm:$0xff] %v2117_v9 }
 0x41b   : > { %2630 = shalt.err (!%p2627_p5)
}
 0x41c   : > { %s2631_s16 = scalar_lea.hbm %s3779_s18, 1024  ;;  %s2635_s27 = scalar_lea.hbm %s3987_s25, 2048 }
 0x41d   : > { %p2632_p1 = scmp.ne.s32.totalorder %s3779_s18, %s2631_s16  ;;  %p2636_p11 = scmp.lt.u32.totalorder %s3779_s18, %s3987_s25 }
 0x41e   : > { %p2637_p8 = scmp.lt.u32.totalorder %s2635_s27, %s2631_s16  ;;  %p2639_p4 = scmp.lt.u32.totalorder %s2631_s16, %s3779_s18 }
 0x41f   : > { %p2633_p10 = pnand %p2632_p1, %p3986_p2 }
 0x420   : > { %p2638_p9 = por %p2637_p8, %p2636_p11 }
 0x421   : > { %p2634_p13 = pneg %p2633_p10 }
 0x422   : > { %p2640_p6 = por %p2639_p4, %p2638_p9 }
 0x424   : > { %p2641_p3 = pnand %p2640_p6, %p2634_p13 }
 0x426   : > { %2644 = shalt.err (!%p2641_p3)
}
 0x427   : > { %s2761_s29 = smov 128   ;;  %s2762_s15 = smov 8  }
 0x428   : > { %2264 = dma.vmem_to_hbm [thread:$0]  (%p3986_p2), %s3774_s20, 1024, %s3779_s18, %s3783_s28, %s2761_s29, %s2761_s29, %s2762_s15  }
 0x429   : > { %s3988_s22 = sshll.u32 %s3076_s24, 7  ;;  %s3989_s20 = sshll.u32 %s2735_s12, 11 }
 0x42a   : > { %s3809_s9 = scalar_lea.vmem [#allocation19], %s3988_s22  ;;  %s3990_s21 = sld [smem:[#allocation29_spill]] }
 0x42b   : > { %s1761_s24 = sshll.u32 %s3809_s9, 4  ;;  %s2763_s17 = smov [#allocation19]   ;;  %s3881_s24 = int_to_ptr.vmem [resolvable:$true] %s1761_s24 }
 0x42c   : > { %s2645_s19 = scalar_lea.vmem %s3881_s24, 2048  ;;  %s2649_s12 = sshll.u32 %s2763_s17, 4  ;;  %s2650_s12 = int_to_ptr.vmem [resolvable:$false] %s2649_s12 }
 0x42d   : > { %p2646_p7 = scmp.ne.s32.totalorder %s3881_s24, %s2645_s19  ;;  %s2651_s29 = scalar_lea.vmem %s2650_s12, 4096 }
 0x42e   : > { %p2652_p5 = scmp.lt.s32.totalorder %s3881_s24, %s2650_s12  ;;  %p2653_p1 = scmp.lt.s32.totalorder %s2651_s29, %s2645_s19 }
 0x42f   : > { %p2647_p12 = pnand %p2646_p7, %p3986_p2 }
 0x430   : > { %s3879_s27 = scalar_lea.hbm %s3990_s21, %s3989_s20  ;;  %p2654_p10 = por %p2653_p1, %p2652_p5 }
 0x431   : > { %p2648_p0 = pneg %p2647_p12 }
 0x433   : > { %p2655_p13 = pnand %p2654_p10, %p2648_p0 }
 0x435   : > { %v1359_v14 = vpop.permute.xlu1 %1358 }
 0x436   : > { %1452 = vst.msk [vmem:[%s3809_s9 + $0x8] sm:$0xf] %vm1321_vm14, %v1359_v14  ;;  %v1355_v15 = vpop.permute.xlu0 %1354 }
 0x437   : > { %1450 = vst.msk [vmem:[%s3809_s9] sm:$0xf] %vm1321_vm14, %v1355_v15 }
 0x439   : > { %v1361_v23 = vpop.permute.xlu1 %1360 }
 0x43a   : > { %1453 = vst.msk [vmem:[%s3809_s9 + $0xc] sm:$0xf] %vm1321_vm14, %v1361_v23 }
 0x43d   : > { %v1357_v19 = vpop.permute.xlu1 %1356  ;;  %v1367_v28 = vpop.permute.xlu0 %1366 }
 0x43e   : > { %1451 = vst.msk [vmem:[%s3809_s9 + $0x4] sm:$0xf] %vm1321_vm14, %v1357_v19  ;;  %1456 = vst.msk [vmem:[%s3809_s9 + $0x18] sm:$0xf] %vm1321_vm14, %v1367_v28 }
 0x441   : > { %v1369_v29 = vpop.permute.xlu1 %1368  ;;  %v1363_v31 = vpop.permute.xlu0 %1362 }
 0x442   : > { %1457 = vst.msk [vmem:[%s3809_s9 + $0x1c] sm:$0xf] %vm1321_vm14, %v1369_v29  ;;  %1454 = vst.msk [vmem:[%s3809_s9 + $0x10] sm:$0xf] %vm1321_vm14, %v1363_v31 }
 0x445   : > { %v1365_v34 = vpop.permute.xlu1 %1364  ;;  %v1375_v24 = vpop.permute.xlu0 %1374 }
 0x446   : > { %1455 = vst.msk [vmem:[%s3809_s9 + $0x14] sm:$0xf] %vm1321_vm14, %v1365_v34  ;;  %1460 = vst.msk [vmem:[%s3809_s9 + $0x28] sm:$0xf] %vm1321_vm14, %v1375_v24 }
 0x449   : > { %v1377_v38 = vpop.permute.xlu1 %1376  ;;  %v1371_v0 = vpop.permute.xlu0 %1370 }
 0x44a   : > { %1461 = vst.msk [vmem:[%s3809_s9 + $0x2c] sm:$0xf] %vm1321_vm14, %v1377_v38  ;;  %1458 = vst.msk [vmem:[%s3809_s9 + $0x20] sm:$0xf] %vm1321_vm14, %v1371_v0 }
 0x44d   : > { %v1373_v1 = vpop.permute.xlu1 %1372 }
 0x44e   : > { %1459 = vst.msk [vmem:[%s3809_s9 + $0x24] sm:$0xf] %vm1321_vm14, %v1373_v1  ;;  %v1379_v61 = vpop.permute.xlu0 %1378 }
 0x44f   : > { %1462 = vst.msk [vmem:[%s3809_s9 + $0x30] sm:$0xf] %vm1321_vm14, %v1379_v61 }
 0x451   : > { %v1383_v4 = vpop.permute.xlu1 %1382 }
 0x452   : > { %1464 = vst.msk [vmem:[%s3809_s9 + $0x38] sm:$0xf] %vm1321_vm14, %v1383_v4  ;;  %v1385_v43 = vpop.permute.xlu0 %1384 }
 0x453   : > { %1465 = vst.msk [vmem:[%s3809_s9 + $0x3c] sm:$0xf] %vm1321_vm14, %v1385_v43 }
 0x455   : > { %v1391_v46 = vpop.permute.xlu1 %1390 }
 0x456   : > { %1468 = vst.msk [vmem:[%s3809_s9 + $0x48] sm:$0xf] %vm1321_vm14, %v1391_v46  ;;  %v1381_v27 = vpop.permute.xlu0 %1380 }
 0x457   : > { %1463 = vst.msk [vmem:[%s3809_s9 + $0x34] sm:$0xf] %vm1321_vm14, %v1381_v27 }
 0x459   : > { %v1387_v2 = vpop.permute.xlu1 %1386 }
 0x45a   : > { %1466 = vst.msk [vmem:[%s3809_s9 + $0x40] sm:$0xf] %vm1321_vm14, %v1387_v2  ;;  %v1393_v51 = vpop.permute.xlu0 %1392 }
 0x45b   : > { %1469 = vst.msk [vmem:[%s3809_s9 + $0x4c] sm:$0xf] %vm1321_vm14, %v1393_v51 }
 0x45d   : > { %v1399_v3 = vpop.permute.xlu1 %1398 }
 0x45e   : > { %1472 = vst.msk [vmem:[%s3809_s9 + $0x58] sm:$0xf] %vm1321_vm14, %v1399_v3  ;;  %v1389_v37 = vpop.permute.xlu0 %1388 }
 0x45f   : > { %1467 = vst.msk [vmem:[%s3809_s9 + $0x44] sm:$0xf] %vm1321_vm14, %v1389_v37 }
 0x461   : > { %v1395_v40 = vpop.permute.xlu1 %1394 }
 0x462   : > { %1470 = vst.msk [vmem:[%s3809_s9 + $0x50] sm:$0xf] %vm1321_vm14, %v1395_v40  ;;  %v1401_v33 = vpop.permute.xlu0 %1400 }
 0x463   : > { %1473 = vst.msk [vmem:[%s3809_s9 + $0x5c] sm:$0xf] %vm1321_vm14, %v1401_v33 }
 0x465   : > { %v1407_v8 = vpop.permute.xlu1 %1406 }
 0x466   : > { %1476 = vst.msk [vmem:[%s3809_s9 + $0x68] sm:$0xf] %vm1321_vm14, %v1407_v8  ;;  %v1397_v35 = vpop.permute.xlu0 %1396 }
 0x467   : > { %1471 = vst.msk [vmem:[%s3809_s9 + $0x54] sm:$0xf] %vm1321_vm14, %v1397_v35 }
 0x469   : > { %v1403_v12 = vpop.permute.xlu1 %1402 }
 0x46a   : > { %1474 = vst.msk [vmem:[%s3809_s9 + $0x60] sm:$0xf] %vm1321_vm14, %v1403_v12  ;;  %v1409_v7 = vpop.permute.xlu0 %1408 }
 0x46b   : > { %1477 = vst.msk [vmem:[%s3809_s9 + $0x6c] sm:$0xf] %vm1321_vm14, %v1409_v7 }
 0x46e   : > { %v1411_v10 = vpop.permute.xlu1 %1410  ;;  %v1405_v39 = vpop.permute.xlu0 %1404 }
 0x46f   : > { %1478 = vst.msk [vmem:[%s3809_s9 + $0x70] sm:$0xf] %vm1321_vm14, %v1411_v10  ;;  %1475 = vst.msk [vmem:[%s3809_s9 + $0x64] sm:$0xf] %vm1321_vm14, %v1405_v39 }
 0x47e   : > { %v1415_v49 = vpop.permute.xlu1 %1414  ;;  %v1413_v41 = vpop.permute.xlu0 %1412 }
 0x47f   : > { %1480 = vst.msk [vmem:[%s3809_s9 + $0x78] sm:$0xf] %vm1321_vm14, %v1415_v49  ;;  %1479 = vst.msk [vmem:[%s3809_s9 + $0x74] sm:$0xf] %vm1321_vm14, %v1413_v41 }
 0x482   : > { %v1417_v17 = vpop.permute.xlu0 %1416 }
 0x483   : > { %1481 = vst.msk [vmem:[%s3809_s9 + $0x7c] sm:$0xf] %vm1321_vm14, %v1417_v17 }
 0x484   : > { %2658 = shalt.err (!%p2655_p13)
}
 0x485   : > { %s2659_s15 = scalar_lea.hbm %s3879_s27, 2048  ;;  %s2663_s20 = scalar_lea.hbm %s3990_s21, 4096 }
 0x486   : > { %p2660_p11 = scmp.ne.s32.totalorder %s3879_s27, %s2659_s15  ;;  %p2664_p4 = scmp.lt.u32.totalorder %s3879_s27, %s3990_s21 }
 0x487   : > { %p2665_p6 = scmp.lt.u32.totalorder %s2663_s20, %s2659_s15  ;;  %p2667_p7 = scmp.lt.u32.totalorder %s2659_s15, %s3879_s27 }
 0x488   : > { %p2661_p8 = pnand %p2660_p11, %p3986_p2 }
 0x489   : > { %p2666_p3 = por %p2665_p6, %p2664_p4 }
 0x48a   : > { %p2662_p9 = pneg %p2661_p8 }
 0x48b   : > { %p2668_p12 = por %p2667_p7, %p2666_p3 }
 0x48d   : > { %p2669_p0 = pnand %p2668_p12, %p2662_p9 }
 0x48f   : > { %2672 = shalt.err (!%p2669_p0)
}
 0x490   : > { %s3991_s19 = smov 64  }
 0x491   : > { %2265 = dma.vmem_to_hbm [thread:$0]  (%p3986_p2), %s3881_s24, 2048, %s3879_s27, %s3783_s28, %s3991_s19, %s3991_s19, %s2759_s3  }
 0x492 PF: > { %s1776_s17 = sand.u32 1, %s2723_s30   ;;  %p3992_p5 = scmp.ne.s32.totalorder %s3968_s1, 0 }
 0x493   : > { %p3993_p1 = scmp.ge.s32.totalorder %s2743_s14, 2  ;;  %s1777_s12 = scalar_lea.sflag [#allocation6], %s1776_s17 }
 0x495   : > { %p2293_p10 = pnand %p3993_p1, %p3992_p5 }
 0x497   : > { %2714 = dma.done.wait (!%p2293_p10), %s1777_s12, 2048  }
 0x498   : > { %2716 = vsyncadd (!%p2293_p10), %s1777_s12, 4294965248  ;;  %s3994_s8 = sadd.s32 4294967294, %s2743_s14  }
 0x499   : > { %s1785_s29 = sand.u32 1, %s3994_s8  }
 0x49a   : > { %s1786_s15 = scalar_lea.sflag [#allocation18], %s1785_s29 }
 0x49b   : > { %2718 = dma.done.wait (!%p2293_p10), %s1786_s15, 3072  }
 0x49c   : > { %2720 = vsyncadd (!%p2293_p10), %s1786_s15, 4294964224  ;;  %s32_s14 = sadd.s32 1, %s2743_s14   ;;  %s3995_s30 = smov %s2727_s10 }
 0x49d   : > { %p29_p2 = scmp.ge.s32.totalorder %s32_s14, 4   ;;  %s3996_s10 = smov %s2731_s11 }
 0x49e   : > { %s3997_s11 = smov %s3020_s26  ;;  %s3998_s12 = smov %s2739_s13 }
 0x49f   : > { %s3999_s13 = smov %s4001_s23  ;;  %31 = sbr.rel (!%p29_p2) target bundleno = 16 (0x10), region = 154 }
 0x4a6   :  { %1800 = vsyncpa [#allocation5], 1 }
 0x4a7   :  { %1802 = vsyncpa [#allocation5 + $0x1], 1 }
 0x4a8   :  { %1803 = vsyncpa [#allocation8], 1 }
 0x4a9   :  { %1804 = vsyncpa [#allocation11], 1 }
 0x4aa   :  { %1805 = vsyncpa [#allocation14], 1 }
 0x4ab   :  { %1806 = vsyncpa [#allocation6], 1 }
 0x4ac   :  { %1808 = vsyncpa [#allocation6 + $0x1], 1 }
 0x4ad   :  { %1809 = vsyncpa [#allocation18], 1 }
 0x4ae   :  { %1811 = vsyncpa [#allocation18 + $0x1], 1 }

</bundles_post_ra>
